<compile_context>
chip_gen: v5e
topology: v5e:2x2
jax: 0.10.0
libtpu: 0.0.40
codegen_flags: <defaults>
</compile_context>

<pallas_src>
import numpy as np
import jax
import jax.numpy as jnp
from jax import lax
from jax.experimental import pallas as pl
from jax.experimental.pallas import tpu as pltpu


def _round_up(x, m):
    return ((x + m - 1) // m) * m


def make_mc_embedding(emb_table, ln_weight, ln_bias, base_freq=1e-4, row_tile=2048):
    """Factory: precompute packed constants once, return a jitted forward fn.

    emb_table: [num_opcodes, emb] f32, ln_weight/ln_bias: [emb] f32.
    Returned fn maps idx [N] int -> (normed [N, emb] f32, pos [N, emb] f32).
    Note: the one-hot-matmul gather assumes a small opcode vocabulary (packed table
    must stay VMEM-resident).  Out-of-range ids produce a zero embedding row rather
    than an error (differs from torch.nn.Embedding).
    """
    num_opcodes, emb = emb_table.shape
    assert emb % 2 == 0, "emb_size must be even for sin/cos positional encoding"
    half = emb // 2
    K = num_opcodes

    # Pack PACK tokens per vreg row so the feature axis is 128-lane dense.
    pack = 128 // emb if (emb <= 128 and 128 % emb == 0) else 1
    PE = pack * emb          # packed feature width (lanes)
    PK = pack * K            # packed one-hot width
    idxw = max(8, _round_up(pack, 8))   # idx columns, padded to sublane granularity
    eps = np.float32(1e-5)

    # ---- hoisted constants (built once, with numpy) -------------------------
    freq = np.power(np.float32(base_freq),
                    np.linspace(0.0, 1.0, half, dtype=np.float32))
    freq_row = np.concatenate([freq, freq]).astype(np.float32)             # [emb]
    off_row = np.concatenate([np.zeros((half,), np.float32),
                              np.full((half,), np.pi / 2.0, np.float32)])  # [emb]
    w_row = np.asarray(ln_weight, dtype=np.float32).reshape(emb)
    b_row = np.asarray(ln_bias, dtype=np.float32).reshape(emb)
    tab = np.asarray(emb_table, dtype=np.float32)

    # PE-width constants: rows [0,idxw) freq-scaled expansion matrix (idx @ rows ->
    # idx*freq replicated over that token's emb lanes), then phase, w, b, slot-id.
    cpe = np.zeros((idxw + 4, PE), np.float32)
    # PK-width constants: rows [0,idxw) ones-expansion (idx @ rows -> idx replicated
    # over that token's K opcode lanes), then the per-lane column pattern (l % K).
    cpk = np.zeros((idxw + 1, PK), np.float32)
    for t in range(pack):
        cpe[t, t * emb:(t + 1) * emb] = freq_row
        cpk[t, t * K:(t + 1) * K] = 1.0
    cpe[idxw, :] = np.tile(off_row, pack)                                   # phase
    cpe[idxw + 1, :] = np.tile(w_row, pack)                                 # LN weight
    cpe[idxw + 2, :] = np.tile(b_row, pack)                                 # LN bias
    cpe[idxw + 3, :] = np.repeat(np.arange(pack, dtype=np.float32), emb)    # slot id
    cpk[idxw, :] = np.tile(np.arange(K, dtype=np.float32), pack)            # l % K

    # Block-diagonal packed embedding table (kept f32; bf16 would halve MXU passes
    # but perturbs embeddings by ~4e-3 relative).
    table_p = np.kron(np.eye(pack, dtype=np.float32), tab)                  # [PK, PE]

    cpe_j = jnp.asarray(cpe)
    cpk_j = jnp.asarray(cpk)
    table_j = jnp.asarray(table_p)

    CPE_R = idxw + 4
    CPK_R = idxw + 1

    def _compute_s(idx_ref, table_ref, cpe_ref, cpk_ref):
        """Shared: packed embedding gather + positional encoding for one tile."""
        idx_v = idx_ref[...]                                                # [RT, idxw] f32
        # Replicate each token id across its slot's K opcode lanes (tiny MXU matmul),
        # then one-hot against the per-lane column pattern (exact small-int compare).
        idx_rep = jnp.dot(idx_v, cpk_ref[0:idxw, :],
                          preferred_element_type=jnp.float32)               # [RT, PK]
        onehot = (idx_rep == cpk_ref[idxw:idxw + 1, :]).astype(jnp.float32)
        emb_o = jnp.dot(onehot, table_ref[...],
                        preferred_element_type=jnp.float32)                 # [RT, PE]
        # Positional encoding: angle = idx*freq via the freq-scaled expansion matmul;
        # single sin with a +pi/2 phase on the "cos" lanes.
        ang = jnp.dot(idx_v, cpe_ref[0:idxw, :],
                      preferred_element_type=jnp.float32)                   # [RT, PE]
        pos = jnp.sin(ang + cpe_ref[idxw:idxw + 1, :])
        return emb_o + pos, pos

    @jax.jit
    def fwd(idx):
        N = idx.shape[0]
        R = -(-N // pack)                                   # packed rows (ceil)
        RT = row_tile if R >= row_tile else _round_up(R, 8)
        R_pad = _round_up(R, RT)
        n_tiles = R_pad // RT
        total = R_pad * pack

        idx_f = jnp.pad(idx.astype(jnp.float32), (0, total - N)).reshape(R_pad, pack)
        idx_f = jnp.pad(idx_f, ((0, 0), (0, idxw - pack)))  # [R_pad, idxw]

        needs_mask = total != N
        n_tok_f = np.float32(N)
        cnt_f = np.float32(N * emb)

        # ---- pass 1: positional encoding + per-lane sum / sum^2 partials ----
        def stats_kernel(idx_ref, table_ref, cpe_ref, cpk_ref, pos_ref, stats_ref):
            @pl.when(pl.program_id(0) == 0)
            def _init():
                stats_ref[...] = jnp.zeros_like(stats_ref)

            s, pos = _compute_s(idx_ref, table_ref, cpe_ref, cpk_ref)
            pos_ref[...] = pos

            if needs_mask:
                # Mask padded tokens out of the global graph-norm statistics.
                base = (pl.program_id(0) * (RT * pack)).astype(jnp.float32)
                rows = lax.broadcasted_iota(jnp.int32, s.shape, 0).astype(jnp.float32)
                tok = base + rows * np.float32(pack) + cpe_ref[idxw + 3:idxw + 4, :]
                s = jnp.where(tok < n_tok_f, s, 0.0)

            stats_ref[0:1, :] += jnp.sum(s, axis=0, keepdims=True)
            stats_ref[1:2, :] += jnp.sum(s * s, axis=0, keepdims=True)

        # ---- pass 2: recompute s, apply fused graph-LayerNorm scale/shift ---
        def norm_kernel(idx_ref, table_ref, cpe_ref, cpk_ref, stats_ref, out_ref):
            s, _ = _compute_s(idx_ref, table_ref, cpe_ref, cpk_ref)
            ssum = jnp.sum(stats_ref[0:1, :])
            ssq = jnp.sum(stats_ref[1:2, :])
            mean = ssum / cnt_f
            # TODO(synk): switch to a centered (Welford-style) cross-tile combine if
            # the data ever has a large mean (E[x^2]-E[x]^2 cancellation).
            var = jnp.maximum(ssq / cnt_f - mean * mean, 0.0)
            inv = 1.0 / (jnp.sqrt(var) + eps)               # scalar, once per tile
            a = cpe_ref[idxw + 1:idxw + 2, :] * inv          # [1, PE]
            c = cpe_ref[idxw + 2:idxw + 3, :] - mean * a     # [1, PE]
            out_ref[...] = s * a + c

        row_spec = pl.BlockSpec((RT, idxw), lambda i: (i, 0))
        tile_out = pl.BlockSpec((RT, PE), lambda i: (i, 0))
        resident = lambda shape: pl.BlockSpec(shape, lambda i: (0, 0))
        cparams = lambda sem: pltpu.CompilerParams(
            dimension_semantics=(sem,), vmem_limit_bytes=32 * 1024 * 1024)

        pos_p, stats = pl.pallas_call(
            stats_kernel,
            grid=(n_tiles,),
            in_specs=[row_spec,
                      resident((PK, PE)),
                      resident((CPE_R, PE)),
                      resident((CPK_R, PK))],
            out_specs=[tile_out, resident((2, PE))],
            out_shape=(jax.ShapeDtypeStruct((R_pad, PE), jnp.float32),
                       jax.ShapeDtypeStruct((2, PE), jnp.float32)),
            compiler_params=cparams("arbitrary"),
        )(idx_f, table_j, cpe_j, cpk_j)

        norm_p = pl.pallas_call(
            norm_kernel,
            grid=(n_tiles,),
            in_specs=[row_spec,
                      resident((PK, PE)),
                      resident((CPE_R, PE)),
                      resident((CPK_R, PK)),
                      resident((2, PE))],
            out_specs=tile_out,
            out_shape=jax.ShapeDtypeStruct((R_pad, PE), jnp.float32),
            compiler_params=cparams("parallel"),
        )(idx_f, table_j, cpe_j, cpk_j, stats)

        # TODO(synk): expose the packed [R_pad, 128] layout to downstream consumers;
        # this lane-minor reshape costs an extra relayout copy of both outputs.
        norm = norm_p.reshape(R_pad * pack, emb)[:N]
        pos = pos_p.reshape(R_pad * pack, emb)[:N]
        return norm, pos

    return fwd


def _reference(idx, table, weight, bias, base_freq=1e-4, eps=1e-5):
    """Pure-JAX reference mirroring the PyTorch module."""
    num_opcodes, emb = table.shape
    half = emb // 2
    freq = jnp.power(jnp.float32(base_freq),
                     jnp.linspace(0.0, 1.0, half, dtype=jnp.float32))
    x = idx.astype(jnp.float32)[:, None] * freq[None, :]
    pos = jnp.concatenate([jnp.sin(x), jnp.cos(x)], axis=-1)
    s = table[idx] + pos
    centered = s - jnp.mean(s)
    std = jnp.sqrt(jnp.mean(centered * centered))
    out = centered / (std + eps) * weight[None, :] + bias[None, :]
    return out, pos


if __name__ == "__main__":
    num_opcodes = 64
    emb_size = 32
    N = 128  # number of opcode tokens

    key = jax.random.PRNGKey(0)
    k_idx, k_tab = jax.random.split(key)

    input_tensor = jax.random.randint(k_idx, (N,), 0, num_opcodes, dtype=jnp.int32)
    emb_table = jax.random.normal(k_tab, (num_opcodes, emb_size), dtype=jnp.float32)
    ln_weight = jnp.ones((emb_size,), dtype=jnp.float32)
    ln_bias = jnp.zeros((emb_size,), dtype=jnp.float32)

    mc_embed = make_mc_embedding(emb_table, ln_weight, ln_bias)
    normed, pos = mc_embed(input_tensor)
    jax.block_until_ready((normed, pos))

    assert normed.shape == (N, emb_size) and pos.shape == (N, emb_size)

    ref_norm, ref_pos = _reference(input_tensor, emb_table, ln_weight, ln_bias)
    assert jnp.allclose(pos, ref_pos, atol=1e-3, rtol=1e-3)
    assert jnp.allclose(normed, ref_norm, atol=1e-3, rtol=1e-3)

    print("KERNEL_OK")
</pallas_src>

<mosaic_0001>
module attributes {stable_mosaic.version = 11 : i64} {
  func.func @stats_kernel(%arg0: i32, %arg1: memref<32x8xf32, #tpu.memory_space<vmem>>, %arg2: memref<256x128xf32, #tpu.memory_space<vmem>>, %arg3: memref<12x128xf32, #tpu.memory_space<vmem>>, %arg4: memref<9x256xf32, #tpu.memory_space<vmem>>, %arg5: memref<32x128xf32, #tpu.memory_space<vmem>>, %arg6: memref<2x128xf32, #tpu.memory_space<vmem>>) attributes {dimension_semantics = [#tpu.dimension_semantics<arbitrary>], iteration_bounds = array<i64: 1>, scalar_prefetch = 0 : i64, scratch_operands = 0 : i64, tpu.core_type = #tpu.core_type<tc>, window_params = [{transform_indices = @transform_0, window_bounds = array<i64: 32, 8>}, {pipeline_mode = #tpu.pipeline_mode<synchronous>, transform_indices = @transform_1, window_bounds = array<i64: 256, 128>}, {pipeline_mode = #tpu.pipeline_mode<synchronous>, transform_indices = @transform_2, window_bounds = array<i64: 12, 128>}, {pipeline_mode = #tpu.pipeline_mode<synchronous>, transform_indices = @transform_3, window_bounds = array<i64: 9, 256>}, {transform_indices = @transform_4, window_bounds = array<i64: 32, 128>}, {pipeline_mode = #tpu.pipeline_mode<synchronous>, transform_indices = @transform_5, window_bounds = array<i64: 2, 128>}]} {
    %c0_i32 = arith.constant 0 : i32
    %0 = arith.cmpi eq, %arg0, %c0_i32 : i32
    %1 = arith.extui %0 : i1 to i32
    %c0_i32_0 = arith.constant 0 : i32
    %2 = arith.cmpi ne, %1, %c0_i32_0 : i32
    scf.if %2 {
      %cst_24 = arith.constant 0.000000e+00 : f32
      %32 = vector.broadcast %cst_24 : f32 to vector<2x128xf32>
      %c0_25 = arith.constant 0 : index
      %c0_26 = arith.constant 0 : index
      %33 = vector.load %arg6[%c0_25, %c0_26] : memref<2x128xf32, #tpu.memory_space<vmem>>, vector<2x128xf32>
      tpu.vector_store %arg6[%c0_25, %c0_26], %32 {strides = array<i32>} : memref<2x128xf32, #tpu.memory_space<vmem>>, vector<2x128xf32>,
    } else {
    }
    %c0 = arith.constant 0 : index
    %c0_1 = arith.constant 0 : index
    %3 = vector.load %arg1[%c0, %c0_1] : memref<32x8xf32, #tpu.memory_space<vmem>>, vector<32x8xf32>
    %c0_2 = arith.constant 0 : index
    %c0_3 = arith.constant 0 : index
    %4 = vector.load %arg4[%c0_2, %c0_3] : memref<9x256xf32, #tpu.memory_space<vmem>>, vector<8x256xf32>
    %cst = arith.constant dense<0.000000e+00> : vector<32x256xf32>
    %5 = tpu.matmul %3, %4, %cst {dimension_numbers = #tpu.dot_dimension_numbers<[1], [0], [0], [1], [0, 0, 1, 1], [], []>} : vector<32x8xf32>, vector<8x256xf32>, vector<32x256xf32> -> vector<32x256xf32>
    %c8 = arith.constant 8 : index
    %c0_4 = arith.constant 0 : index
    %6 = vector.load %arg4[%c8, %c0_4] : memref<9x256xf32, #tpu.memory_space<vmem>>, vector<1x256xf32>
    %7 = vector.broadcast %6 : vector<1x256xf32> to vector<32x256xf32>
    %8 = arith.cmpf oeq, %5, %7 : vector<32x256xf32>
    %9 = arith.extui %8 : vector<32x256xi1> to vector<32x256xi32>
    %10 = arith.sitofp %9 : vector<32x256xi32> to vector<32x256xf32>
    %c0_5 = arith.constant 0 : index
    %c0_6 = arith.constant 0 : index
    %11 = vector.load %arg2[%c0_5, %c0_6] : memref<256x128xf32, #tpu.memory_space<vmem>>, vector<256x128xf32>
    %cst_7 = arith.constant dense<0.000000e+00> : vector<32x128xf32>
    %12 = tpu.matmul %10, %11, %cst_7 {dimension_numbers = #tpu.dot_dimension_numbers<[1], [0], [0], [1], [0, 0, 1, 1], [], []>} : vector<32x256xf32>, vector<256x128xf32>, vector<32x128xf32> -> vector<32x128xf32>
    %c0_8 = arith.constant 0 : index
    %c0_9 = arith.constant 0 : index
    %13 = vector.load %arg3[%c0_8, %c0_9] : memref<12x128xf32, #tpu.memory_space<vmem>>, vector<8x128xf32>
    %cst_10 = arith.constant dense<0.000000e+00> : vector<32x128xf32>
    %14 = tpu.matmul %3, %13, %cst_10 {dimension_numbers = #tpu.dot_dimension_numbers<[1], [0], [0], [1], [0, 0, 1, 1], [], []>} : vector<32x8xf32>, vector<8x128xf32>, vector<32x128xf32> -> vector<32x128xf32>
    %c8_11 = arith.constant 8 : index
    %c0_12 = arith.constant 0 : index
    %15 = vector.load %arg3[%c8_11, %c0_12] : memref<12x128xf32, #tpu.memory_space<vmem>>, vector<1x128xf32>
    %16 = vector.broadcast %15 : vector<1x128xf32> to vector<32x128xf32>
    %17 = arith.addf %14, %16 : vector<32x128xf32>
    %18 = math.sin %17 : vector<32x128xf32>
    %19 = arith.addf %12, %18 : vector<32x128xf32>
    %c0_13 = arith.constant 0 : index
    %c0_14 = arith.constant 0 : index
    %20 = vector.load %arg5[%c0_13, %c0_14] : memref<32x128xf32, #tpu.memory_space<vmem>>, vector<32x128xf32>
    tpu.vector_store %arg5[%c0_13, %c0_14], %18 {strides = array<i32>} : memref<32x128xf32, #tpu.memory_space<vmem>>, vector<32x128xf32>,
    %c0_15 = arith.constant 0 : index
    %c0_16 = arith.constant 0 : index
    %21 = vector.load %arg6[%c0_15, %c0_16] : memref<2x128xf32, #tpu.memory_space<vmem>>, vector<1x128xf32>
    %cst_17 = arith.constant dense<0.000000e+00> : vector<128xf32>
    %22 = vector.multi_reduction <add>, %19, %cst_17 [0] : vector<32x128xf32> to vector<128xf32>
    %23 = vector.shape_cast %22 : vector<128xf32> to vector<1x128xf32>
    %24 = arith.addf %21, %23 : vector<1x128xf32>
    %c0_18 = arith.constant 0 : index
    %c0_19 = arith.constant 0 : index
    %25 = vector.load %arg6[%c0_18, %c0_19] : memref<2x128xf32, #tpu.memory_space<vmem>>, vector<1x128xf32>
    tpu.vector_store %arg6[%c0_18, %c0_19], %24 {strides = array<i32>} : memref<2x128xf32, #tpu.memory_space<vmem>>, vector<1x128xf32>,
    %c1 = arith.constant 1 : index
    %c0_20 = arith.constant 0 : index
    %26 = vector.load %arg6[%c1, %c0_20] : memref<2x128xf32, #tpu.memory_space<vmem>>, vector<1x128xf32>
    %27 = arith.mulf %19, %19 : vector<32x128xf32>
    %cst_21 = arith.constant dense<0.000000e+00> : vector<128xf32>
    %28 = vector.multi_reduction <add>, %27, %cst_21 [0] : vector<32x128xf32> to vector<128xf32>
    %29 = vector.shape_cast %28 : vector<128xf32> to vector<1x128xf32>
    %30 = arith.addf %26, %29 : vector<1x128xf32>
    %c1_22 = arith.constant 1 : index
    %c0_23 = arith.constant 0 : index
    %31 = vector.load %arg6[%c1_22, %c0_23] : memref<2x128xf32, #tpu.memory_space<vmem>>, vector<1x128xf32>
    tpu.vector_store %arg6[%c1_22, %c0_23], %30 {strides = array<i32>} : memref<2x128xf32, #tpu.memory_space<vmem>>, vector<1x128xf32>,
    return
  }
  func.func @transform_0(%arg0: i32) -> (i32, i32) {
    %c0_i32 = arith.constant 0 : i32
    %c0_i32_0 = arith.constant 0 : i32
    return %arg0, %c0_i32 : i32, i32
  }
  func.func @transform_1(%arg0: i32) -> (i32, i32) {
    %c0_i32 = arith.constant 0 : i32
    %c0_i32_0 = arith.constant 0 : i32
    %c0_i32_1 = arith.constant 0 : i32
    return %c0_i32, %c0_i32_0 : i32, i32
  }
  func.func @transform_2(%arg0: i32) -> (i32, i32) {
    %c0_i32 = arith.constant 0 : i32
    %c0_i32_0 = arith.constant 0 : i32
    %c0_i32_1 = arith.constant 0 : i32
    return %c0_i32, %c0_i32_0 : i32, i32
  }
  func.func @transform_3(%arg0: i32) -> (i32, i32) {
    %c0_i32 = arith.constant 0 : i32
    %c0_i32_0 = arith.constant 0 : i32
    %c0_i32_1 = arith.constant 0 : i32
    return %c0_i32, %c0_i32_0 : i32, i32
  }
  func.func @transform_4(%arg0: i32) -> (i32, i32) {
    %c0_i32 = arith.constant 0 : i32
    %c0_i32_0 = arith.constant 0 : i32
    return %arg0, %c0_i32 : i32, i32
  }
  func.func @transform_5(%arg0: i32) -> (i32, i32) {
    %c0_i32 = arith.constant 0 : i32
    %c0_i32_0 = arith.constant 0 : i32
    %c0_i32_1 = arith.constant 0 : i32
    return %c0_i32, %c0_i32_0 : i32, i32
  }
}

module attributes {stable_mosaic.version = 11 : i64} {
  func.func @norm_kernel(%arg0: i32, %arg1: memref<32x8xf32, #tpu.memory_space<vmem>>, %arg2: memref<256x128xf32, #tpu.memory_space<vmem>>, %arg3: memref<12x128xf32, #tpu.memory_space<vmem>>, %arg4: memref<9x256xf32, #tpu.memory_space<vmem>>, %arg5: memref<2x128xf32, #tpu.memory_space<vmem>>, %arg6: memref<32x128xf32, #tpu.memory_space<vmem>>) attributes {dimension_semantics = [#tpu.dimension_semantics<parallel>], iteration_bounds = array<i64: 1>, scalar_prefetch = 0 : i64, scratch_operands = 0 : i64, tpu.core_type = #tpu.core_type<tc>, window_params = [{transform_indices = @transform_0, window_bounds = array<i64: 32, 8>}, {pipeline_mode = #tpu.pipeline_mode<synchronous>, transform_indices = @transform_1, window_bounds = array<i64: 256, 128>}, {pipeline_mode = #tpu.pipeline_mode<synchronous>, transform_indices = @transform_2, window_bounds = array<i64: 12, 128>}, {pipeline_mode = #tpu.pipeline_mode<synchronous>, transform_indices = @transform_3, window_bounds = array<i64: 9, 256>}, {pipeline_mode = #tpu.pipeline_mode<synchronous>, transform_indices = @transform_4, window_bounds = array<i64: 2, 128>}, {transform_indices = @transform_5, window_bounds = array<i64: 32, 128>}]} {
    %c0 = arith.constant 0 : index
    %c0_0 = arith.constant 0 : index
    %0 = vector.load %arg1[%c0, %c0_0] : memref<32x8xf32, #tpu.memory_space<vmem>>, vector<32x8xf32>
    %c0_1 = arith.constant 0 : index
    %c0_2 = arith.constant 0 : index
    %1 = vector.load %arg4[%c0_1, %c0_2] : memref<9x256xf32, #tpu.memory_space<vmem>>, vector<8x256xf32>
    %cst = arith.constant dense<0.000000e+00> : vector<32x256xf32>
    %2 = tpu.matmul %0, %1, %cst {dimension_numbers = #tpu.dot_dimension_numbers<[1], [0], [0], [1], [0, 0, 1, 1], [], []>} : vector<32x8xf32>, vector<8x256xf32>, vector<32x256xf32> -> vector<32x256xf32>
    %c8 = arith.constant 8 : index
    %c0_3 = arith.constant 0 : index
    %3 = vector.load %arg4[%c8, %c0_3] : memref<9x256xf32, #tpu.memory_space<vmem>>, vector<1x256xf32>
    %4 = vector.broadcast %3 : vector<1x256xf32> to vector<32x256xf32>
    %5 = arith.cmpf oeq, %2, %4 : vector<32x256xf32>
    %6 = arith.extui %5 : vector<32x256xi1> to vector<32x256xi32>
    %7 = arith.sitofp %6 : vector<32x256xi32> to vector<32x256xf32>
    %c0_4 = arith.constant 0 : index
    %c0_5 = arith.constant 0 : index
    %8 = vector.load %arg2[%c0_4, %c0_5] : memref<256x128xf32, #tpu.memory_space<vmem>>, vector<256x128xf32>
    %cst_6 = arith.constant dense<0.000000e+00> : vector<32x128xf32>
    %9 = tpu.matmul %7, %8, %cst_6 {dimension_numbers = #tpu.dot_dimension_numbers<[1], [0], [0], [1], [0, 0, 1, 1], [], []>} : vector<32x256xf32>, vector<256x128xf32>, vector<32x128xf32> -> vector<32x128xf32>
    %c0_7 = arith.constant 0 : index
    %c0_8 = arith.constant 0 : index
    %10 = vector.load %arg3[%c0_7, %c0_8] : memref<12x128xf32, #tpu.memory_space<vmem>>, vector<8x128xf32>
    %cst_9 = arith.constant dense<0.000000e+00> : vector<32x128xf32>
    %11 = tpu.matmul %0, %10, %cst_9 {dimension_numbers = #tpu.dot_dimension_numbers<[1], [0], [0], [1], [0, 0, 1, 1], [], []>} : vector<32x8xf32>, vector<8x128xf32>, vector<32x128xf32> -> vector<32x128xf32>
    %c8_10 = arith.constant 8 : index
    %c0_11 = arith.constant 0 : index
    %12 = vector.load %arg3[%c8_10, %c0_11] : memref<12x128xf32, #tpu.memory_space<vmem>>, vector<1x128xf32>
    %13 = vector.broadcast %12 : vector<1x128xf32> to vector<32x128xf32>
    %14 = arith.addf %11, %13 : vector<32x128xf32>
    %15 = math.sin %14 : vector<32x128xf32>
    %16 = arith.addf %9, %15 : vector<32x128xf32>
    %c0_12 = arith.constant 0 : index
    %c0_13 = arith.constant 0 : index
    %17 = vector.load %arg5[%c0_12, %c0_13] : memref<2x128xf32, #tpu.memory_space<vmem>>, vector<1x128xf32>
    %18 = vector.shape_cast %17 : vector<1x128xf32> to vector<1x1x128xf32>
    %cst_14 = arith.constant dense<0.000000e+00> : vector<1xf32>
    %19 = vector.multi_reduction <add>, %18, %cst_14 [1, 2] : vector<1x1x128xf32> to vector<1xf32>
    %20 = vector.shape_cast %19 : vector<1xf32> to vector<1x1x1xf32>
    %21 = vector.extract %20[0, 0, 0] : f32 from vector<1x1x1xf32>
    %c1 = arith.constant 1 : index
    %c0_15 = arith.constant 0 : index
    %22 = vector.load %arg5[%c1, %c0_15] : memref<2x128xf32, #tpu.memory_space<vmem>>, vector<1x128xf32>
    %23 = vector.shape_cast %22 : vector<1x128xf32> to vector<1x1x128xf32>
    %cst_16 = arith.constant dense<0.000000e+00> : vector<1xf32>
    %24 = vector.multi_reduction <add>, %23, %cst_16 [1, 2] : vector<1x1x128xf32> to vector<1xf32>
    %25 = vector.shape_cast %24 : vector<1xf32> to vector<1x1x1xf32>
    %26 = vector.extract %25[0, 0, 0] : f32 from vector<1x1x1xf32>
    %cst_17 = arith.constant 4.096000e+03 : f32
    %27 = arith.divf %21, %cst_17 : f32
    %cst_18 = arith.constant 4.096000e+03 : f32
    %28 = arith.divf %26, %cst_18 : f32
    %29 = arith.mulf %27, %27 : f32
    %30 = arith.subf %28, %29 : f32
    %cst_19 = arith.constant 0.000000e+00 : f32
    %31 = arith.maximumf %30, %cst_19 : f32
    %32 = math.sqrt %31 : f32
    %cst_20 = arith.constant 9.99999974E-6 : f32
    %33 = arith.addf %32, %cst_20 : f32
    %cst_21 = arith.constant 1.000000e+00 : f32
    %34 = arith.divf %cst_21, %33 : f32
    %c9 = arith.constant 9 : index
    %c0_22 = arith.constant 0 : index
    %35 = vector.load %arg3[%c9, %c0_22] : memref<12x128xf32, #tpu.memory_space<vmem>>, vector<1x128xf32>
    %36 = vector.broadcast %34 : f32 to vector<1x128xf32>
    %37 = arith.mulf %35, %36 : vector<1x128xf32>
    %c10 = arith.constant 10 : index
    %c0_23 = arith.constant 0 : index
    %38 = vector.load %arg3[%c10, %c0_23] : memref<12x128xf32, #tpu.memory_space<vmem>>, vector<1x128xf32>
    %39 = vector.broadcast %27 : f32 to vector<1x128xf32>
    %40 = arith.mulf %39, %37 : vector<1x128xf32>
    %41 = arith.subf %38, %40 : vector<1x128xf32>
    %42 = vector.broadcast %37 : vector<1x128xf32> to vector<32x128xf32>
    %43 = arith.mulf %16, %42 : vector<32x128xf32>
    %44 = vector.broadcast %41 : vector<1x128xf32> to vector<32x128xf32>
    %45 = arith.addf %43, %44 : vector<32x128xf32>
    %c0_24 = arith.constant 0 : index
    %c0_25 = arith.constant 0 : index
    %46 = vector.load %arg6[%c0_24, %c0_25] : memref<32x128xf32, #tpu.memory_space<vmem>>, vector<32x128xf32>
    tpu.vector_store %arg6[%c0_24, %c0_25], %45 {strides = array<i32>} : memref<32x128xf32, #tpu.memory_space<vmem>>, vector<32x128xf32>,
    return
  }
  func.func @transform_0(%arg0: i32) -> (i32, i32) {
    %c0_i32 = arith.constant 0 : i32
    %c0_i32_0 = arith.constant 0 : i32
    return %arg0, %c0_i32 : i32, i32
  }
  func.func @transform_1(%arg0: i32) -> (i32, i32) {
    %c0_i32 = arith.constant 0 : i32
    %c0_i32_0 = arith.constant 0 : i32
    %c0_i32_1 = arith.constant 0 : i32
    return %c0_i32, %c0_i32_0 : i32, i32
  }
  func.func @transform_2(%arg0: i32) -> (i32, i32) {
    %c0_i32 = arith.constant 0 : i32
    %c0_i32_0 = arith.constant 0 : i32
    %c0_i32_1 = arith.constant 0 : i32
    return %c0_i32, %c0_i32_0 : i32, i32
  }
  func.func @transform_3(%arg0: i32) -> (i32, i32) {
    %c0_i32 = arith.constant 0 : i32
    %c0_i32_0 = arith.constant 0 : i32
    %c0_i32_1 = arith.constant 0 : i32
    return %c0_i32, %c0_i32_0 : i32, i32
  }
  func.func @transform_4(%arg0: i32) -> (i32, i32) {
    %c0_i32 = arith.constant 0 : i32
    %c0_i32_0 = arith.constant 0 : i32
    %c0_i32_1 = arith.constant 0 : i32
    return %c0_i32, %c0_i32_0 : i32, i32
  }
  func.func @transform_5(%arg0: i32) -> (i32, i32) {
    %c0_i32 = arith.constant 0 : i32
    %c0_i32_0 = arith.constant 0 : i32
    return %arg0, %c0_i32 : i32, i32
  }
}

</mosaic_0001>

<bundles_post_ra>
// kernel: fwd.3
= control target key start
LH: loop header
LB: loop body
LE: loop exit
PB: predicated region body
PF: predicated region fallthrough
CT: control target
= control target key end

     0   :  { %10 = vsyncpa [#allocation3], 0  ;;  %s1116_s21 = smov [#allocation2]   ;;  %s1117_s23 = smov 128   ;;  %s1884_s0 = inlined_call_operand.vmem [shape: f32[32,8], index: 0, kind: input, shape index: {}]   ;;  %s1885_s1 = inlined_call_operand.hbm [shape: f32[256,128], index: 1, kind: input, shape index: {}]   ;;  %s1886_s2 = inlined_call_operand.vmem [shape: f32[12,128], index: 2, kind: input, shape index: {}]   ;;  %s1887_s3 = inlined_call_operand.vmem [shape: f32[9,256], index: 3, kind: input, shape index: {}]   ;;  %s1888_s4 = inlined_call_operand.vmem [shape: f32[2,128], index: 4, kind: input, shape index: {}]   ;;  %s1889_s5 = inlined_call_operand.vmem [shape: f32[32,128], index: 5, kind: output, shape index: {}]  }
   0x1   :  { %s17_s20 = sshll.u32 %s1885_s1, 4  ;;  %s19_s22 = sshll.u32 %s1116_s21, 4  ;;  %s18_s20 = int_to_ptr.hbm [resolvable:$true] %s17_s20  ;;  %s20_s22 = int_to_ptr.vmem [resolvable:$true] %s19_s22 }
   0x2   :  { %s1118_s24 = smov 8  }
   0x3   :  { %25 = dma.hbm_to_vmem [thread:$0]  %s18_s20, 4096, %s20_s22, [#allocation3], %s1117_s23, %s1117_s23, %s1118_s24  }
   0x4   :  { %1114 = dma.done.wait [#allocation3], 4096  }
   0x5   :  { %1115 = vsyncadd [#allocation3], 4294963200  ;;  %vm887_vm0 = vcmask 1040384   ;;  %vm42_vm1 = vcmask 64512   ;;  %v40_v0 = vld [vmem:[%s1887_s3] sm:$0xff]  ;;  %v41_v5 = vld [vmem:[%s1887_s3 + $0x8] sm:$0xff] }
   0x6   :  { %v176_v1 = vld [vmem:[%s1886_s2] sm:$0xff]  ;;  %70 = vmatpush.msra.mxu0 %v40_v0  ;;  %99 = vmatpush.msra.mxu1 %v41_v5  ;;  %v159_v6 = vld [vmem:[#allocation2 + $0x78] sm:$0xff]  ;;  %v158_v7 = vld [vmem:[#allocation2 + $0x70] sm:$0xff]  ;;  %v1119_v43 = vmov 4096.0   ;;  %v1120_v62 = vmov 1.0   ;;  %s1127_s25 = smov 0.0  }
   0x7   :  { %v886_v2 = vld [vmem:[%s1888_s4] sm:$0x1]  ;;  %194 = vmatpush.msra.mxu2 %v176_v1  ;;  %v898_v8 = vld [vmem:[%s1888_s4 + $0x1] sm:$0x1]  ;;  %v175_v9 = vld [vmem:[#allocation2 + $0xf8] sm:$0xff]  ;;  %1028 = vmatpush.msra.mxu3 %v159_v6  ;;  %1084 = vrcp.f32 %v1119_v43 }
   0x8   :  { %v888_v3 = vsel %vm887_vm0, %v886_v2, 0.0  ;;  %v36_v4 = vld [vmem:[%s1884_s0] sm:$0xff]  ;;  %v157_v10 = vld [vmem:[#allocation2 + $0x68] sm:$0xff]  ;;  %857 = vmatpush.msrb.mxu0 %v175_v9  ;;  %v174_v11 = vld [vmem:[#allocation2 + $0xf0] sm:$0xff]  ;;  %1044 = vmatpush.msrb.mxu1 %v175_v9  ;;  %v899_v13 = vsel %vm887_vm0, %v898_v8, 0.0 }
   0x9   :  { %889 = vadd.xlane.f32.xlu0 %v888_v3  ;;  %987 = vmatmul.msk.f32.vlgmr.msra.gmra.mxu0 %vm42_vm1, %v36_v4  ;;  %v173_v12 = vld [vmem:[#allocation2 + $0xe8] sm:$0xff]  ;;  %v156_v15 = vld [vmem:[#allocation2 + $0x60] sm:$0xff]  ;;  %v155_v17 = vld [vmem:[#allocation2 + $0x58] sm:$0xff]  ;;  %v1895_v43 = vmov 2475754826  }
   0xa   :  { %1004 = vmatmul.msk.f32.vlgmr.msra.gmra.mxu2 %vm42_vm1, %v36_v4  ;;  %991 = vmatmul.msk.f32.vlgmr.msra.gmra.mxu1 %vm42_vm1, %v36_v4  ;;  %v37_v14 = vld [vmem:[%s1884_s0 + $0x8] sm:$0xff]  ;;  %v172_v16 = vld [vmem:[#allocation2 + $0xe0] sm:$0xff]  ;;  %v171_v18 = vld [vmem:[#allocation2 + $0xd8] sm:$0xff] }
   0xb   :  { %828 = vmatpush.msrb.mxu2 %v159_v6  ;;  %1029 = vmatpush.msra.mxu3 %v158_v7  ;;  %v154_v19 = vld [vmem:[#allocation2 + $0x50] sm:$0xff]  ;;  %v153_v22 = vld [vmem:[#allocation2 + $0x48] sm:$0xff]  ;;  %v152_v23 = vld [vmem:[#allocation2 + $0x40] sm:$0xff] }
   0xc   :  { %858 = vmatpush.msrb.mxu0 %v174_v11  ;;  %1045 = vmatpush.msrb.mxu1 %v174_v11  ;;  %v170_v20 = vld [vmem:[#allocation2 + $0xd0] sm:$0xff]  ;;  %v151_v24 = vld [vmem:[#allocation2 + $0x38] sm:$0xff]  ;;  %v149_v27 = vld [vmem:[#allocation2 + $0x28] sm:$0xff] }
   0xd   :  { %829 = vmatpush.msrb.mxu2 %v158_v7  ;;  %1030 = vmatpush.msra.mxu3 %v157_v10  ;;  %v38_v21 = vld [vmem:[%s1884_s0 + $0x10] sm:$0xff]  ;;  %v39_v26 = vld [vmem:[%s1884_s0 + $0x18] sm:$0xff]  ;;  %v169_v28 = vld [vmem:[#allocation2 + $0xc8] sm:$0xff]  ;;  %v1085_v44 = vpop.eup %1084 }
   0xe   :  { %859 = vmatpush.msrb.mxu0 %v173_v12  ;;  %1046 = vmatpush.msrb.mxu1 %v173_v12  ;;  %v150_v25 = vld [vmem:[#allocation2 + $0x30] sm:$0xff]  ;;  %v148_v29 = vld [vmem:[#allocation2 + $0x20] sm:$0xff]  ;;  %v147_v31 = vld [vmem:[#allocation2 + $0x18] sm:$0xff]  ;;  %v910_v48 = vmul.f32 4096.0, %v1085_v44  ;;  %vm914_vm4 = vweird.f32 %v1085_v44 }
   0xf   :  { %830 = vmatpush.msrb.mxu2 %v157_v10  ;;  %1031 = vmatpush.msra.mxu3 %v156_v15  ;;  %v168_v30 = vld [vmem:[#allocation2 + $0xc0] sm:$0xff]  ;;  %v167_v32 = vld [vmem:[#allocation2 + $0xb8] sm:$0xff]  ;;  %v146_v33 = vld [vmem:[#allocation2 + $0x10] sm:$0xff] }
  0x10   :  { %860 = vmatpush.msrb.mxu0 %v172_v16  ;;  %1047 = vmatpush.msrb.mxu1 %v172_v16  ;;  %v166_v34 = vld [vmem:[#allocation2 + $0xb0] sm:$0xff]  ;;  %v145_v35 = vld [vmem:[#allocation2 + $0x8] sm:$0xff]  ;;  %v144_v37 = vld [vmem:[#allocation2] sm:$0xff]  ;;  %v911_v53 = vsub.f32 1.0, %v910_v48 }
  0x11   :  { %900 = vadd.xlane.f32.xlu0 %v899_v13  ;;  %988 = vmatmul.msk.f32.gmra.mxu0 %vm42_vm1, %v37_v14  ;;  %v165_v36 = vld [vmem:[#allocation2 + $0xa8] sm:$0xff]  ;;  %v164_v38 = vld [vmem:[#allocation2 + $0xa0] sm:$0xff]  ;;  %v163_v39 = vld [vmem:[#allocation2 + $0x98] sm:$0xff] }
  0x12   :  { %1005 = vmatmul.msk.f32.gmra.mxu2 %vm42_vm1, %v37_v14  ;;  %992 = vmatmul.msk.f32.gmra.mxu1 %vm42_vm1, %v37_v14  ;;  %v162_v40 = vld [vmem:[#allocation2 + $0x90] sm:$0xff]  ;;  %v161_v41 = vld [vmem:[#allocation2 + $0x88] sm:$0xff]  ;;  %v160_v42 = vld [vmem:[#allocation2 + $0x80] sm:$0xff]  ;;  %v912_v61 = vmul.f32 %v1085_v44, %v911_v53 }
  0x13   :  { %831 = vmatpush.msrb.mxu2 %v156_v15  ;;  %1032 = vmatpush.msra.mxu3 %v155_v17  ;;  %v995_v49 = vld [vmem:[%s1887_s3 + $0x10] ss:$8 sm:$0x3]  ;;  %v1209_v4 = vld [vmem:[%s1886_s2 + $0x8] ss:$0 sm:$0xff] }
  0x14   :  { %861 = vmatpush.msrb.mxu0 %v171_v18  ;;  %1048 = vmatpush.msrb.mxu1 %v171_v18  ;;  %v116_v51 = vperm.slane %v995_v49, 0  ;;  %v117_v57 = vperm.slane %v995_v49, 1  ;;  %v913_v2 = vadd.f32 %v1085_v44, %v912_v61  ;;  %v1901_v49 = vmov 2102212464  }
  0x15   :  { %832 = vmatpush.msrb.mxu2 %v155_v17  ;;  %1033 = vmatpush.msra.mxu3 %v154_v19 }
  0x16   :  { %862 = vmatpush.msrb.mxu0 %v170_v20  ;;  %1049 = vmatpush.msrb.mxu1 %v170_v20  ;;  %v915_v8 = vsel %vm914_vm4, %v1085_v44, %v913_v2 }
  0x17   :  { %833 = vmatpush.msrb.mxu2 %v154_v19  ;;  %1034 = vmatpush.msra.mxu3 %v153_v22 }
  0x18   :  { %863 = vmatpush.msrb.mxu0 %v169_v28  ;;  %1050 = vmatpush.msrb.mxu1 %v169_v28 }
  0x19   :  { %989 = vmatmul.msk.f32.gmra.mxu0 %vm42_vm1, %v38_v21  ;;  %834 = vmatpush.msrb.mxu2 %v153_v22 }
  0x1a   :  { %1006 = vmatmul.msk.f32.gmra.mxu2 %vm42_vm1, %v38_v21  ;;  %1035 = vmatpush.msra.mxu3 %v152_v23 }
  0x1b   :  { %993 = vmatmul.msk.f32.gmra.mxu1 %vm42_vm1, %v38_v21  ;;  %835 = vmatpush.msrb.mxu2 %v152_v23 }
  0x1c   :  { %1036 = vmatpush.msra.mxu3 %v151_v24  ;;  %864 = vmatpush.msrb.mxu0 %v168_v30 }
  0x1d   :  { %836 = vmatpush.msrb.mxu2 %v151_v24  ;;  %1051 = vmatpush.msrb.mxu1 %v168_v30 }
  0x1e   :  { %1037 = vmatpush.msra.mxu3 %v150_v25  ;;  %865 = vmatpush.msrb.mxu0 %v167_v32 }
  0x1f   :  { %837 = vmatpush.msrb.mxu2 %v150_v25  ;;  %1052 = vmatpush.msrb.mxu1 %v167_v32 }
  0x20   :  { %1038 = vmatpush.msra.mxu3 %v149_v27  ;;  %866 = vmatpush.msrb.mxu0 %v166_v34 }
  0x21   :  { %990 = vmatmul.msk.f32.gmra.mxu0 %vm42_vm1, %v39_v26  ;;  %838 = vmatpush.msrb.mxu2 %v149_v27 }
  0x22   :  { %1007 = vmatmul.msk.f32.gmra.mxu2 %vm42_vm1, %v39_v26  ;;  %1039 = vmatpush.msra.mxu3 %v148_v29 }
  0x23   :  { %994 = vmatmul.msk.f32.gmra.mxu1 %vm42_vm1, %v39_v26  ;;  %839 = vmatpush.msrb.mxu2 %v148_v29 }
  0x24   :  { %1040 = vmatpush.msra.mxu3 %v147_v31  ;;  %1053 = vmatpush.msrb.mxu1 %v166_v34  ;;  %v1121_v34 = vmov 920167782  }
  0x25   :  { %840 = vmatpush.msrb.mxu2 %v147_v31  ;;  %867 = vmatpush.msrb.mxu0 %v165_v36 }
  0x26   :  { %1041 = vmatpush.msra.mxu3 %v146_v33  ;;  %1054 = vmatpush.msrb.mxu1 %v165_v36  ;;  %v1903_v36 = vmov 1326507024  }
  0x27   :  { %841 = vmatpush.msrb.mxu2 %v146_v33  ;;  %868 = vmatpush.msrb.mxu0 %v164_v38 }
  0x28   :  { %1042 = vmatpush.msra.mxu3 %v145_v35  ;;  %1055 = vmatpush.msrb.mxu1 %v164_v38 }
  0x29   :  { %842 = vmatpush.msrb.mxu2 %v145_v35  ;;  %869 = vmatpush.msrb.mxu0 %v163_v39 }
  0x2a   :  { %1043 = vmatpush.msra.mxu3 %v144_v37  ;;  %1056 = vmatpush.msrb.mxu1 %v163_v39 }
  0x2b   :  { %843 = vmatpush.msrb.mxu2 %v144_v37  ;;  %870 = vmatpush.msrb.mxu0 %v162_v40 }
  0x2c   :  { %1057 = vmatpush.msrb.mxu1 %v162_v40 }
  0x2d   :  { %871 = vmatpush.msrb.mxu0 %v161_v41 }
  0x2e   :  { %1058 = vmatpush.msrb.mxu1 %v161_v41 }
  0x2f   :  { %872 = vmatpush.msrb.mxu0 %v160_v42 }
  0x30   :  { %1059 = vmatpush.msrb.mxu1 %v160_v42 }
  0x7c   :  { %v890_v45 = vpop.xlane.xlu0 %889 }
  0x7d   :  { %v891_v46 = vrot.slane %v890_v45, 4 }
  0x7f   :  { %v892_v47 = vadd.f32 %v891_v46, %v890_v45  ;;  %v1892_v46 = vmov 2131351028  }
  0x81   :  { %v893_v50 = vrot.slane %v892_v47, 2 }
  0x83   :  { %v894_v52 = vadd.f32 %v893_v50, %v892_v47 }
  0x84   :  { %v901_v54 = vpop.xlane.xlu0 %900 }
  0x85   :  { %v902_v55 = vrot.slane %v901_v54, 4  ;;  %v895_v56 = vrot.slane %v894_v52, 1 }
  0x86   :  { %v72_v58 = vpop.f32.mrf.mxu0 }
  0x87   :  { %v903_v59 = vadd.f32 %v902_v55, %v901_v54  ;;  %vm120_vm2 = vcmp.eq.f32.partialorder %v72_v58, %v116_v51  ;;  %v896_v60 = vadd.f32 %v895_v56, %v894_v52  ;;  %v101_v63 = vpop.f32.mrf.mxu1  ;;  %v1897_v56 = vmov 683565275  }
  0x88   :  { %1020 = vmatmul.msk.f32.vlgmr.msrb.gmra.mxu2 %vm120_vm2, %v1120_v62  ;;  %vm121_vm3 = vcmp.eq.f32.partialorder %v101_v63, %v117_v57 }
  0x89   :  { %v904_v0 = vrot.slane %v903_v59, 2  ;;  %1060 = vpush %v896_v60  ;;  %1024 = vmatmul.msk.f32.vlgmr.msrb.gmra.mxu0 %vm121_vm3, %v1120_v62 }
  0x8b   :  { %v905_v1 = vadd.f32 %v904_v0, %v903_v59 }
  0x8d   :  { %v906_v3 = vrot.slane %v905_v1, 1  ;;  %v196_v6 = vpop.f32.mrf.mxu2 }
  0x8e   :  { %v75_v5 = vpop.f32.mrf.mxu0  ;;  %v1212_v10 = vadd.f32 %v1209_v4, %v196_v6 }
  0x8f   :  { %vm122_vm5 = vcmp.eq.f32.partialorder %v75_v5, %v116_v51  ;;  %v907_v7 = vadd.f32 %v906_v3, %v905_v1  ;;  %v104_v9 = vpop.f32.mrf.mxu1 }
  0x90   :  { %1021 = vmatmul.msk.f32.vlgmr.msra.gmra.mxu3 %vm122_vm5, %v1120_v62  ;;  %vm123_vm6 = vcmp.eq.f32.partialorder %v104_v9, %v117_v57  ;;  %v211_v11 = vand.u32 2139095040, %v1212_v10  ;;  %v1891_v32 = vand.u32 2147483647, %v1212_v10 }
  0x91   :  { %1062 = vpush %v907_v7  ;;  %1025 = vmatmul.msk.f32.gmra.mxu0 %vm123_vm6, %v1120_v62 }
  0x92   :  { %1064 = vpush %v915_v8  ;;  %v212_v15 = vshrl.u32 %v211_v11, 23  ;;  %v215_v40 = vand.u32 8388607, %v1891_v32 }
  0x94   :  { %v1008_v17 = vadd.s32 4294967169, %v212_v15  ;;  %v216_v55 = vor.u32 8388608, %v215_v40 }
  0x95   :  { %v199_v14 = vpop.f32.mrf.mxu2 }
  0x96   :  { %v78_v12 = vpop.f32.mrf.mxu0  ;;  %v1216_v16 = vadd.f32 %v1209_v4, %v199_v14  ;;  %v218_v21 = vadd.s32 1, %v1008_v17  ;;  %v1253_v3 = vshll.u32 %v216_v55, 8 }
  0x97   :  { %vm124_vm7 = vcmp.eq.f32.partialorder %v78_v12, %v116_v51 }
  0x98   :  { %1022 = vmatmul.msk.f32.gmra.mxu3 %vm124_vm7, %v1120_v62  ;;  %v107_v13 = vpop.f32.mrf.mxu1  ;;  %v366_v20 = vand.u32 2139095040, %v1216_v16  ;;  %vm219_vm11 = vcmp.gt.s32.totalorder %v218_v21, 0 }
  0x99   :  { %vm125_vm8 = vcmp.eq.f32.partialorder %v107_v13, %v117_v57  ;;  %v220_v25 = vsel %vm219_vm11, %v218_v21, 0  ;;  %v1286_v21 = vand.u32 65535, %v1253_v3 }
  0x9a   :  { %1026 = vmatmul.msk.f32.vlgmr.msrb.gmra.mxu1 %vm125_vm8, %v1120_v62  ;;  %v367_v23 = vshrl.u32 %v366_v20, 23  ;;  %v222_v28 = vand.u32 31, %v220_v25  ;;  %v1226_v39 = vshrl.u32 %v220_v25, 5 }
  0x9c   :  { %v1011_v26 = vadd.s32 4294967169, %v367_v23  ;;  %v223_v31 = vsub.s32 32, %v222_v28  ;;  %v237_v35 = vshll.u32 %v1121_v34, %v222_v28  ;;  %v228_v44 = vshll.u32 %v1895_v43, %v222_v28 }
  0x9d   :  { %v202_v22 = vpop.f32.mrf.mxu2  ;;  %v231_v48 = vshll.u32 %v1892_v46, %v222_v28  ;;  %vm243_vm13 = vcmp.lt.s32.totalorder %v1226_v39, 4  ;;  %vm240_vm15 = vcmp.lt.s32.totalorder %v1226_v39, 1  ;;  %vm242_vm0 = vcmp.lt.s32.totalorder %v1226_v39, 3 }
  0x9e   :  { %v81_v18 = vpop.f32.mrf.mxu0  ;;  %v1220_v24 = vadd.f32 %v1209_v4, %v202_v22  ;;  %v373_v29 = vadd.s32 1, %v1011_v26  ;;  %v238_v37 = vshrl.u32 %v1903_v36, %v223_v31  ;;  %v229_v47 = vshrl.u32 %v1892_v46, %v223_v31 }
  0x9f   :  { %vm126_vm9 = vcmp.eq.f32.partialorder %v81_v18, %v116_v51  ;;  %v232_v50 = vshrl.u32 %v1901_v49, %v223_v31  ;;  %v234_v51 = vshll.u32 %v1901_v49, %v222_v28  ;;  %v235_v52 = vshrl.u32 %v1121_v34, %v223_v31 }
  0xa0   :  { %1023 = vmatmul.msk.f32.gmra.mxu3 %vm126_vm9, %v1120_v62  ;;  %v110_v19 = vpop.f32.mrf.mxu1  ;;  %v521_v27 = vand.u32 2139095040, %v1220_v24  ;;  %vm374_vm12 = vcmp.gt.s32.totalorder %v373_v29, 0  ;;  %v239_v53 = vor.u32 %v238_v37, %v237_v35  ;;  %v226_v58 = vshrl.u32 %v1895_v43, %v223_v31 }
  0xa1   :  { %vm127_vm10 = vcmp.eq.f32.partialorder %v110_v19, %v117_v57  ;;  %v375_v38 = vsel %vm374_vm12, %v373_v29, 0  ;;  %v225_v57 = vshll.u32 %v1897_v56, %v222_v28  ;;  %v230_v60 = vor.u32 %v229_v47, %v228_v44 }
  0xa2   :  { %1027 = vmatmul.msk.f32.gmra.mxu1 %vm127_vm10, %v1120_v62  ;;  %v522_v30 = vshrl.u32 %v521_v27, 23  ;;  %v1231_v45 = vand.u32 31, %v375_v38  ;;  %v233_v61 = vor.u32 %v232_v50, %v231_v48  ;;  %v1890_v62 = vand.u32 2147483647, %v1216_v16 }
  0xa3   :  { %v236_v63 = vor.u32 %v235_v52, %v234_v51  ;;  %v253_v0 = vsel %vm243_vm13, %v239_v53, 1326507024  ;;  %v224_v5 = vshrl.u32 %v1897_v56, %v223_v31  ;;  %v227_v6 = vor.u32 %v226_v58, %v225_v57 }
  0xa4   :  { %v1014_v33 = vadd.s32 4294967169, %v522_v30  ;;  %v1245_v59 = vsub.s32 32, %v1231_v45  ;;  %vm241_vm1 = vcmp.lt.s32.totalorder %v1226_v39, 2  ;;  %v389_v7 = vshll.u32 %v1901_v49, %v1231_v45 }
  0xa5   :  { %v205_v42 = vpop.f32.mrf.mxu2  ;;  %v252_v9 = vsel %vm240_vm15, %v230_v60, %v233_v61  ;;  %v254_v11 = vsel %vm242_vm0, %v236_v63, %v253_v0  ;;  %v249_v12 = vsel %vm243_vm13, %v236_v63, 920167782  ;;  %v1273_v14 = vand.u32 8388607, %v1890_v62 }
  0xa6   :  { %v528_v41 = vadd.s32 1, %v1014_v33  ;;  %v1240_v54 = vadd.f32 %v1209_v4, %v205_v42  ;;  %v1255_v4 = vshrl.u32 %v375_v38, 5  ;;  %v390_v8 = vshrl.u32 %v1121_v34, %v1245_v59 }
  0xa7   :  { %v392_v15 = vshll.u32 %v1121_v34, %v1231_v45  ;;  %v393_v17 = vshrl.u32 %v1903_v36, %v1245_v59  ;;  %v245_v19 = vsel %vm243_vm13, %v233_v61, 2102212464  ;;  %v255_v20 = vsel %vm241_vm1, %v252_v9, %v254_v11 }
  0xa8   :  { %vm529_vm14 = vcmp.gt.s32.totalorder %v528_v41, 0  ;;  %v676_v2 = vand.u32 2139095040, %v1240_v54  ;;  %v1289_v22 = vshrl.u32 %v1253_v3, 16  ;;  %v391_v23 = vor.u32 %v390_v8, %v389_v7 }
  0xa9   :  { %v530_v1 = vsel %vm529_vm14, %v528_v41, 0  ;;  %vm398_vm2 = vcmp.lt.s32.totalorder %v1255_v4, 4  ;;  %v244_v25 = vsel %vm240_vm15, %v224_v5, %v227_v6  ;;  %v248_v26 = vsel %vm240_vm15, %v227_v6, %v230_v60 }
  0xaa   :  { %v1269_v13 = vand.u32 31, %v530_v1  ;;  %v677_v18 = vshrl.u32 %v676_v2, 23  ;;  %v246_v28 = vsel %vm242_vm0, %v230_v60, %v245_v19  ;;  %v250_v29 = vsel %vm242_vm0, %v233_v61, %v249_v12 }
  0xab   :  { %v371_v30 = vor.u32 8388608, %v1273_v14  ;;  %v394_v31 = vor.u32 %v393_v17, %v392_v15  ;;  %v1306_v33 = vshrl.u32 %v530_v1, 5  ;;  %v260_v37 = vshrl.u32 %v255_v20, 16 }
  0xac   :  { %v1297_v27 = vsub.s32 32, %v1269_v13  ;;  %v1017_v35 = vadd.s32 4294967169, %v677_v18  ;;  %v383_v38 = vshll.u32 %v1895_v43, %v1231_v45  ;;  %v384_v40 = vshrl.u32 %v1892_v46, %v1245_v59 }
  0xad   :  { %v386_v41 = vshll.u32 %v1892_v46, %v1231_v45  ;;  %v387_v42 = vshrl.u32 %v1901_v49, %v1245_v59  ;;  %v404_v44 = vsel %vm398_vm2, %v391_v23, 920167782  ;;  %v544_v47 = vshll.u32 %v1901_v49, %v1269_v13 }
  0xae   :  { %v1325_v48 = vsel %vm241_vm1, %v244_v25, %v246_v28  ;;  %v1329_v50 = vsel %vm241_vm1, %v248_v26, %v250_v29  ;;  %v545_v51 = vshrl.u32 %v1121_v34, %v1297_v27  ;;  %v547_v52 = vshll.u32 %v1121_v34, %v1269_v13 }
  0xaf   :  { %v380_v53 = vshll.u32 %v1897_v56, %v1231_v45  ;;  %v381_v55 = vshrl.u32 %v1895_v43, %v1245_v59  ;;  %v548_v57 = vshrl.u32 %v1903_v36, %v1297_v27  ;;  %v683_v58 = vadd.s32 1, %v1017_v35 }
  0xb0   :  { %v259_v39 = vand.u32 65535, %v255_v20  ;;  %v1342_v60 = vmul.u32 %v260_v37, %v1286_v21  ;;  %v408_v61 = vsel %vm398_vm2, %v394_v31, 1326507024  ;;  %v282_v63 = vshrl.u32 %v1329_v50, 16 }
  0xb1   :  { %v1347_v0 = vor.u32 %v384_v40, %v383_v38  ;;  %v1349_v45 = vor.u32 %v387_v42, %v386_v41  ;;  %vm553_vm3 = vcmp.lt.s32.totalorder %v1306_v33, 4  ;;  %vm395_vm4 = vcmp.lt.s32.totalorder %v1255_v4, 1 }
  0xb2   :  { %vm397_vm5 = vcmp.lt.s32.totalorder %v1255_v4, 3  ;;  %v1356_v2 = vor.u32 %v545_v51, %v544_v47  ;;  %v281_v5 = vand.u32 65535, %v1329_v50  ;;  %v1360_v6 = vor.u32 %v381_v55, %v380_v53 }
  0xb3   :  { %v549_v7 = vor.u32 %v548_v57, %v547_v52  ;;  %vm684_vm6 = vcmp.gt.s32.totalorder %v683_v58, 0  ;;  %v261_v8 = vmul.u32 %v259_v39, %v1286_v21  ;;  %v265_v9 = vshll.u32 %v1342_v60, 16 }
  0xb4   :  { %v1367_v11 = vmul.u32 %v282_v63, %v1286_v21  ;;  %vm396_vm7 = vcmp.lt.s32.totalorder %v1255_v4, 2  ;;  %v407_v12 = vsel %vm395_vm4, %v1347_v0, %v1349_v45  ;;  %v409_v14 = vsel %vm397_vm5, %v391_v23, %v408_v61 }
  0xb5   :  { %v1377_v15 = vmul.u32 %v259_v39, %v1289_v22  ;;  %v264_v17 = vmul.u32 %v260_v37, %v1289_v22  ;;  %v1384_v19 = vshrl.u32 %v1897_v56, %v1245_v59  ;;  %v685_v20 = vsel %vm684_vm6, %v683_v58, 0 }
  0xb6   :  { %v403_v25 = vsel %vm395_vm4, %v1360_v6, %v1347_v0  ;;  %v405_v23 = vsel %vm397_vm5, %v1349_v45, %v404_v44  ;;  %v1393_v26 = vshll.u32 %v371_v30, 8  ;;  %v1398_v28 = vsel %vm553_vm3, %v1356_v2, 920167782 }
  0xb7   :  { %v283_v59 = vmul.u32 %v281_v5, %v1286_v21  ;;  %v1402_v29 = vmul.u32 %v281_v5, %v1289_v22  ;;  %v1406_v31 = vsel %vm396_vm7, %v407_v12, %v409_v14  ;;  %v1410_v37 = vsel %vm553_vm3, %v549_v7, 1326507024 }
  0xb8   :  { %v1412_v30 = vshrl.u32 %v685_v20, 5  ;;  %vm269_vm8 = vc.u32 %v261_v8, %v265_v9  ;;  %v287_v38 = vshll.u32 %v1367_v11, 16  ;;  %v1415_v40 = vand.u32 31, %v685_v20 }
  0xb9   :  { %v1421_v42 = vsel %vm396_vm7, %v403_v25, %v405_v23  ;;  %v267_v44 = vshll.u32 %v1377_v15, 16  ;;  %v271_v47 = vadd.s32 %v265_v9, %v261_v8  ;;  %v412_v51 = vand.u32 65535, %v1393_v26 }
  0xba   :  { %s1061_s18 = spop %1060  ;;  %v415_v52 = vshrl.u32 %v1406_v31, 16  ;;  %v1128_v55 = vmov 0   ;;  %v1899_v58 = vshll.u32 %v1402_v29, 16  ;;  %v1894_v39 = vand.u32 2147483647, %v1220_v24 }
  0xbb   :  { %v270_v57 = vsel %vm269_vm8, 1, %v1128_v55  ;;  %vm1429_vm9 = vc.u32 %v283_v59, %v287_v38  ;;  %v1433_v5 = vadd.s32 %v287_v38, %v283_v59  ;;  %v1436_v7 = vshrl.u32 %v1393_v26, 16 }
  0xbc   :  { %v437_v8 = vshrl.u32 %v1421_v42, 16  ;;  %v414_v12 = vand.u32 65535, %v1406_v31  ;;  %v538_v14 = vshll.u32 %v1895_v43, %v1269_v13  ;;  %v539_v20 = vshrl.u32 %v1892_v46, %v1297_v27 }
  0xbd   :  { %v1446_v25 = vmul.u32 %v415_v52, %v412_v51  ;;  %v436_v23 = vand.u32 65535, %v1421_v42  ;;  %v541_v59 = vshll.u32 %v1892_v46, %v1269_v13  ;;  %v542_v38 = vshrl.u32 %v1901_v49, %v1297_v27 }
  0xbe   :  { %vm1453_vm10 = vc.u32 %v271_v47, %v267_v44  ;;  %v525_v62 = vand.u32 8388607, %v1894_v39  ;;  %v535_v32 = vshll.u32 %v1897_v56, %v1269_v13  ;;  %v536_v42 = vshrl.u32 %v1895_v43, %v1297_v27 }
  0xbf   :  { %v1463_v18 = vadd.s32 %v270_v57, %v264_v17  ;;  %v286_v46 = vmul.u32 %v282_v63, %v1289_v22  ;;  %v292_v44 = vsel %vm1429_vm9, 1, %v1128_v55  ;;  %v1471_v47 = vmul.u32 %v437_v8, %v412_v51 }
  0xc0   :  { %vm1476_vm11 = vc.u32 %v1433_v5, %v1899_v58  ;;  %v416_v17 = vmul.u32 %v414_v12, %v412_v51  ;;  %v1480_v57 = vor.u32 %v539_v20, %v538_v14  ;;  %v1482_v39 = vor.u32 %v542_v38, %v541_v59 }
  0xc1   :  { %v1485_v22 = vmul.u32 %v414_v12, %v1436_v7  ;;  %v420_v50 = vshll.u32 %v1446_v25, 16  ;;  %v1489_v63 = vmul.u32 %v436_v23, %v1436_v7  ;;  %vm550_vm12 = vcmp.lt.s32.totalorder %v1306_v33, 1 }
  0xc2   :  { %s1281_s19 = spop %1062  ;;  %v438_v61 = vmul.u32 %v436_v23, %v412_v51  ;;  %v1493_v43 = vor.u32 %v536_v42, %v535_v32  ;;  %v442_v12 = vshll.u32 %v1471_v47, 16  ;;  %vm552_vm14 = vcmp.lt.s32.totalorder %v1306_v33, 3 }
  0xc3   :  { %s1065_s20 = spop %1064  ;;  %vm551_vm0 = vcmp.lt.s32.totalorder %v1306_v33, 2  ;;  %v562_v32 = vsel %vm550_vm12, %v1480_v57, %v1482_v39  ;;  %v422_v51 = vshll.u32 %v1485_v22, 16  ;;  %vm1507_vm1 = vc.u32 %v416_v17, %v420_v50 }
  0xc4   :  { %s1299_s21 = smul.f32 %s1065_s20, %s1061_s18  ;;  %v1900_v59 = vshll.u32 %v1489_v63, 16  ;;  %v560_v38 = vsel %vm552_vm14, %v1482_v39, %v1398_v28  ;;  %v564_v42 = vsel %vm552_vm14, %v1356_v2, %v1410_v37  ;;  %vm446_vm6 = vc.u32 %v438_v61, %v442_v12 }
  0xc5   :  { %s926_s22 = smul.f32 %s1065_s20, %s1281_s19  ;;  %v274_v41 = vsel %vm1453_vm10, 1, %v1128_v55  ;;  %v294_v2 = vadd.s32 %v292_v44, %v286_v46  ;;  %v441_v37 = vmul.u32 %v437_v8, %v1436_v7  ;;  %v419_v46 = vmul.u32 %v415_v52, %v1436_v7 }
  0xc6   :  { %s927_s23 = smul.f32 %s1299_s21, %s1299_s21  ;;  %v425_v8 = vsel %vm1507_vm1, 1, %v1128_v55  ;;  %v1558_v13 = vsub.s32 32, %v1415_v40  ;;  %v268_v31 = vshrl.u32 %v1377_v15, 16  ;;  %v288_v52 = vshrl.u32 %v1367_v11, 16 }
  0xc7   :  { %v702_v11 = vshll.u32 %v1121_v34, %v1415_v40  ;;  %v1912_v15 = vmov 1326507024  }
  0xc8   :  { %s928_s24 = ssub.f32 %s926_s22, %s927_s23 }
  0xca   :  { %s929_s26 = smax.f32 %s1127_s25, %s928_s24 }
  0xcb   :  { %v1352_v1 = vstv %s929_s26 }
  0xcc   :  { %1086 = vrsqrt.f32 %v1352_v1  ;;  %vm938_vm13 = vcmp.eq.f32.partialorder %v1352_v1, inf  ;;  %v941_v14 = vand.u32 2147483648, %v1352_v1  ;;  %vm940_vm15 = vcmp.eq.f32.partialorder %v1352_v1, 0.0 }
  0xd2   :  { %v1087_v35 = vpop.eup %1086 }
  0xd3   :  { %v932_v21 = vmul.f32 %v1087_v35, %v1352_v1 }
  0xd5   :  { %v933_v53 = vmul.f32 %v1087_v35, %v932_v21 }
  0xd7   :  { %v934_v9 = vmul.f32 0.5, %v933_v53 }
  0xd9   :  { %v935_v21 = vsub.f32 1.5, %v934_v9 }
  0xdb   :  { %v936_v9 = vmul.f32 %v1087_v35, %v935_v21  ;;  %v526_v21 = vor.u32 8388608, %v525_v62 }
  0xdd   :  { %v937_v35 = vmul.f32 %v936_v9, %v1352_v1  ;;  %v1524_v9 = vshll.u32 %v526_v21, 8 }
  0xdf   :  { %v939_v20 = vsel %vm938_vm13, %v1352_v1, %v937_v35  ;;  %v558_v1 = vsel %vm550_vm12, %v1493_v43, %v1480_v57  ;;  %v426_v35 = vadd.s32 %v420_v50, %v416_v17  ;;  %v568_v56 = vshrl.u32 %v1524_v9, 16 }
  0xe0   :  { %v942_v62 = vsel %vm940_vm15, %v941_v14, %v939_v20  ;;  %v1526_v14 = vadd.s32 %v442_v12, %v438_v61  ;;  %v565_v20 = vsel %vm551_vm0, %v562_v32, %v564_v42  ;;  %v561_v17 = vsel %vm551_vm0, %v558_v1, %v560_v38 }
  0xe1   :  { %1066 = vpush %v942_v62  ;;  %v567_v62 = vand.u32 65535, %v1524_v9  ;;  %v569_v58 = vand.u32 65535, %v565_v20  ;;  %v570_v28 = vshrl.u32 %v565_v20, 16  ;;  %v447_v50 = vsel %vm446_vm6, 1, %v1128_v55 }
  0xe2   :  { %v296_v32 = vsel %vm1476_vm11, 1, %v1128_v55  ;;  %vm450_vm8 = vc.u32 %v1526_v14, %v1900_v59  ;;  %vm428_vm9 = vc.u32 %v426_v35, %v422_v51  ;;  %v592_v44 = vshrl.u32 %v561_v17, 16 }
  0xe3   :  { %v571_v61 = vmul.u32 %v569_v58, %v567_v62  ;;  %v1539_v21 = vmul.u32 %v570_v28, %v567_v62  ;;  %v1541_v12 = vmul.u32 %v569_v58, %v568_v56  ;;  %v449_v7 = vadd.s32 %v447_v50, %v441_v37 }
  0xe4   :  { %v451_v23 = vsel %vm450_vm8, 1, %v1128_v55  ;;  %v574_v1 = vmul.u32 %v570_v28, %v568_v56  ;;  %v276_v51 = vadd.s32 %v274_v41, %v1463_v18  ;;  %v298_v42 = vadd.s32 %v296_v32, %v294_v2 }
  0xe5   :  { %v575_v58 = vshll.u32 %v1539_v21, 16  ;;  %v577_v53 = vshll.u32 %v1541_v12, 16  ;;  %v427_v35 = vadd.s32 %v425_v8, %v419_v46  ;;  %v429_v20 = vsel %vm428_vm9, 1, %v1128_v55 }
  0xe6   :  { %v591_v49 = vand.u32 65535, %v561_v17  ;;  %v1566_v36 = vmul.u32 %v592_v44, %v567_v62  ;;  %v703_v28 = vshrl.u32 %v1912_v15, %v1558_v13  ;;  %v443_v37 = vshrl.u32 %v1471_v47, 16 }
  0xe7   :  { %vm579_vm10 = vc.u32 %v571_v61, %v575_v58  ;;  %v581_v38 = vadd.s32 %v575_v58, %v571_v61  ;;  %v453_v50 = vadd.s32 %v451_v23, %v449_v7  ;;  %v1913_v18 = vmov 2102212464  }
  0xe8   :  { %v580_v59 = vsel %vm579_vm10, 1, %v1128_v55  ;;  %v699_v41 = vshll.u32 %v1913_v18, %v1415_v40  ;;  %v700_v2 = vshrl.u32 %v1121_v34, %v1558_v13  ;;  %v290_v61 = vshrl.u32 %v1402_v29, 16 }
  0xe9   :  { %vm583_vm11 = vc.u32 %v581_v38, %v577_v53  ;;  %v582_v17 = vadd.s32 %v580_v59, %v574_v1  ;;  %v1914_v32 = vshrl.u32 %v1342_v60, 16  ;;  %v421_v8 = vshrl.u32 %v1446_v25, 16 }
  0xea   :  { %v431_v58 = vadd.s32 %v429_v20, %v427_v35  ;;  %v584_v53 = vsel %vm583_vm11, 1, %v1128_v55  ;;  %vm708_vm13 = vcmp.lt.s32.totalorder %v1412_v30, 4  ;;  %v299_v47 = vadd.s32 %v298_v42, %v288_v52 }
  0xeb   :  { %v277_v46 = vadd.s32 %v276_v51, %v1914_v32  ;;  %v593_v7 = vmul.u32 %v591_v49, %v567_v62  ;;  %v595_v23 = vmul.u32 %v591_v49, %v568_v56  ;;  %v597_v38 = vshll.u32 %v1566_v36, 16 }
  0xec   :  { %v704_v15 = vor.u32 %v703_v28, %v702_v11  ;;  %v1915_v34 = vshll.u32 %v1402_v29, 16  ;;  %v445_v60 = vshrl.u32 %v1489_v63, 16  ;;  %v454_v1 = vadd.s32 %v453_v50, %v443_v37 }
  0xed   :  { %v400_v25 = vsel %vm398_vm2, %v1349_v45, 2102212464  ;;  %v576_v51 = vshrl.u32 %v1539_v21, 16  ;;  %v586_v52 = vadd.s32 %v584_v53, %v582_v17  ;;  %v596_v62 = vmul.u32 %v592_v44, %v568_v56 }
  0xee   :  { %v1587_v59 = vadd.s32 %v1433_v5, %v1915_v34  ;;  %v1594_v49 = vadd.s32 %v277_v46, %v268_v31  ;;  %v423_v42 = vshrl.u32 %v1485_v22, 16  ;;  %v432_v35 = vadd.s32 %v431_v58, %v421_v8 }
  0xef   :  { %v1916_v29 = vmov 683565275   ;;  %v300_v20 = vadd.s32 %v299_v47, %v290_v61  ;;  %v399_v11 = vsel %vm395_vm4, %v1384_v19, %v1360_v6  ;;  %v599_v28 = vshll.u32 %v595_v23, 16 }
  0xf0   :  { %v534_v5 = vshrl.u32 %v1916_v29, %v1297_v27  ;;  %vm601_vm2 = vc.u32 %v593_v7, %v597_v38  ;;  %v401_v56 = vsel %vm397_vm5, %v1347_v0, %v400_v25  ;;  %v455_v45 = vadd.s32 %v454_v1, %v445_v60 }
  0xf1   :  { %v555_v22 = vsel %vm553_vm3, %v1482_v39, 2102212464  ;;  %v602_v21 = vsel %vm601_vm2, 1, %v1128_v55  ;;  %v578_v27 = vshrl.u32 %v1541_v12, 16  ;;  %v587_v44 = vadd.s32 %v586_v52, %v576_v51 }
  0xf2   :  { %v603_v31 = vadd.s32 %v597_v38, %v593_v7  ;;  %v604_v37 = vadd.s32 %v602_v21, %v596_v62  ;;  %vm303_vm4 = vc.u32 %v1594_v49, %v1587_v59  ;;  %v1613_v6 = vadd.s32 %v432_v35, %v423_v42 }
  0xf3   :  { %v1917_v19 = vshll.u32 %v1489_v63, 16  ;;  %v554_v39 = vsel %vm550_vm12, %v534_v5, %v1493_v43  ;;  %v556_v12 = vsel %vm552_vm14, %v1480_v57, %v555_v22  ;;  %v598_v50 = vshrl.u32 %v1566_v36, 16 }
  0xf4   :  { %vm605_vm3 = vc.u32 %v603_v31, %v599_v28  ;;  %v673_v61 = vand.u32 2147483647, %v1240_v54  ;;  %v304_v17 = vadd.s32 1, %v300_v20  ;;  %v402_v63 = vsel %vm396_vm7, %v399_v11, %v401_v56 }
  0xf5   :  { %v1618_v0 = vadd.s32 %v1526_v14, %v1917_v19  ;;  %v459_v32 = vadd.s32 1, %v455_v45  ;;  %v606_v14 = vsel %vm605_vm3, 1, %v1128_v55  ;;  %v1631_v46 = vadd.s32 %v587_v44, %v578_v27 }
  0xf6   :  { %v600_v8 = vshrl.u32 %v595_v23, 16  ;;  %v1633_v43 = vadd.s32 %v603_v31, %v599_v28  ;;  %v608_v58 = vadd.s32 %v606_v14, %v604_v37  ;;  %v701_v53 = vor.u32 %v700_v2, %v699_v41 }
  0xf7   :  { %v718_v36 = vsel %vm708_vm13, %v704_v15, 1326507024  ;;  %vm458_vm5 = vc.u32 %v1613_v6, %v1618_v0  ;;  %v557_v4 = vsel %vm551_vm0, %v554_v39, %v556_v12  ;;  %v680_v47 = vand.u32 8388607, %v673_v61 }
  0xf8   :  { %v609_v57 = vadd.s32 %v608_v58, %v598_v50  ;;  %v1918_v7 = vmov 2475754826   ;;  %v1919_v38 = vmov 2131351028   ;;  %v305_v41 = vsel %vm303_vm4, %v304_v17, %v300_v20 }
  0xf9   :  { %v693_v23 = vshll.u32 %v1918_v7, %v1415_v40  ;;  %v694_v34 = vshrl.u32 %v1919_v38, %v1558_v13  ;;  %v456_v2 = vmul.u32 %v1393_v26, %v402_v63  ;;  %v696_v33 = vshll.u32 %v1919_v38, %v1415_v40 }
  0xfa   :  { %v697_v15 = vshrl.u32 %v1913_v18, %v1558_v13  ;;  %v460_v60 = vsel %vm458_vm5, %v459_v32, %v455_v45  ;;  %v610_v1 = vadd.s32 %v609_v57, %v600_v8  ;;  %v611_v25 = vmul.u32 %v1524_v9, %v557_v4 }
  0xfb   :  { %vm613_vm7 = vc.u32 %v1631_v46, %v1633_v43  ;;  %v690_v51 = vshll.u32 %v1916_v29, %v1415_v40  ;;  %v691_v52 = vshrl.u32 %v1918_v7, %v1558_v13  ;;  %v1662_v26 = vor.u32 %v694_v34, %v693_v23 }
  0xfc   :  { %v1664_v62 = vor.u32 %v697_v15, %v696_v33  ;;  %v614_v42 = vadd.s32 1, %v610_v1  ;;  %v681_v35 = vor.u32 8388608, %v680_v47  ;;  %vm705_vm12 = vcmp.lt.s32.totalorder %v1412_v30, 1 }
  0xfd   :  { %vm707_vm14 = vcmp.lt.s32.totalorder %v1412_v30, 3  ;;  %v1920_v9 = vmul.u32 %v1253_v3, %v1325_v48  ;;  %v461_v5 = vadd.s32 %v460_v60, %v456_v2  ;;  %vm706_vm15 = vcmp.lt.s32.totalorder %v1412_v30, 2 }
  0xfe   :  { %v615_v40 = vsel %vm613_vm7, %v614_v42, %v610_v1  ;;  %v1672_v11 = vor.u32 %v691_v52, %v690_v51  ;;  %v717_v28 = vsel %vm705_vm12, %v1662_v26, %v1664_v62  ;;  %v719_v56 = vsel %vm707_vm14, %v701_v53, %v718_v36 }
  0xff   :  { %v306_v18 = vadd.s32 %v305_v41, %v1920_v9  ;;  %v616_v20 = vadd.s32 %v615_v40, %v611_v25  ;;  %v714_v45 = vsel %vm708_vm13, %v701_v53, 920167782  ;;  %v720_v3 = vsel %vm706_vm15, %v717_v28, %v719_v56 }
 0x100   :  { %v1684_v48 = vshll.u32 %v681_v35, 8  ;;  %v462_v21 = vadd.s32 536870912, %v461_v5  ;;  %v724_v27 = vand.u32 65535, %v720_v3  ;;  %v725_v44 = vshrl.u32 %v720_v3, 16 }
 0x101   :  { %v307_v22 = vadd.s32 536870912, %v306_v18  ;;  %v617_v19 = vadd.s32 536870912, %v616_v20  ;;  %v713_v39 = vsel %vm705_vm12, %v1672_v11, %v1662_v26  ;;  %v715_v12 = vsel %vm707_vm14, %v1664_v62, %v714_v45 }
 0x102   :  { %v722_v31 = vand.u32 65535, %v1684_v48  ;;  %v723_v37 = vshrl.u32 %v1684_v48, 16  ;;  %v1697_v32 = vshrl.u32 %v462_v21, 30  ;;  %v716_v8 = vsel %vm706_vm15, %v713_v39, %v715_v12 }
 0x103   :  { %v1695_v63 = vshrl.u32 %v307_v22, 30  ;;  %v1701_v53 = vshrl.u32 %v617_v19, 30  ;;  %v747_v47 = vshrl.u32 %v716_v8, 16  ;;  %v746_v38 = vand.u32 65535, %v716_v8 }
 0x104   :  { %v726_v50 = vmul.u32 %v724_v27, %v722_v31  ;;  %v727_v17 = vmul.u32 %v725_v44, %v722_v31  ;;  %v728_v14 = vmul.u32 %v724_v27, %v723_v37  ;;  %v464_v4 = vshll.u32 %v1697_v32, 30 }
 0x105   :  { %v309_v36 = vshll.u32 %v1695_v63, 30  ;;  %v729_v7 = vmul.u32 %v725_v44, %v723_v37  ;;  %v619_v34 = vshll.u32 %v1701_v53, 30  ;;  %v749_v15 = vmul.u32 %v747_v47, %v722_v31 }
 0x106   :  { %v730_v58 = vshll.u32 %v727_v17, 16  ;;  %v732_v57 = vshll.u32 %v728_v14, 16  ;;  %v1709_v33 = vsub.s32 %v461_v5, %v464_v4  ;;  %v748_v1 = vmul.u32 %v746_v38, %v722_v31 }
 0x107   :  { %v1707_v2 = vsub.s32 %v306_v18, %v309_v36  ;;  %v1711_v25 = vsub.s32 %v616_v20, %v619_v34  ;;  %v750_v52 = vmul.u32 %v746_v38, %v723_v37  ;;  %v752_v42 = vshll.u32 %v749_v15, 16 }
 0x108   :  { %vm734_vm0 = vc.u32 %v726_v50, %v730_v58  ;;  %v736_v23 = vadd.s32 %v730_v58, %v726_v50  ;;  %v467_v9 = vsub.s32 0, %v1709_v33  ;;  %v731_v18 = vshrl.u32 %v727_v17, 16 }
 0x109   :  { %v735_v41 = vsel %vm734_vm0, 1, %v1128_v55  ;;  %vm311_vm6 = vcmp.lt.s32.totalorder %v1707_v2, 0  ;;  %v312_v35 = vsub.s32 0, %v1707_v2  ;;  %v751_v5 = vmul.u32 %v747_v47, %v723_v37 }
 0x10a   :  { %vm738_vm1 = vc.u32 %v736_v23, %v732_v57  ;;  %v737_v60 = vadd.s32 %v735_v41, %v729_v7  ;;  %vm756_vm8 = vc.u32 %v748_v1, %v752_v42  ;;  %vm466_vm9 = vcmp.lt.s32.totalorder %v1709_v33, 0 }
 0x10b   :  { %v739_v51 = vsel %vm738_vm1, 1, %v1128_v55  ;;  %v622_v28 = vsub.s32 0, %v1711_v25  ;;  %v754_v20 = vshll.u32 %v750_v52, 16  ;;  %vm621_vm10 = vcmp.lt.s32.totalorder %v1711_v25, 0 }
 0x10c   :  { %v741_v40 = vadd.s32 %v739_v51, %v737_v60  ;;  %v689_v56 = vshrl.u32 %v1916_v29, %v1558_v13  ;;  %v313_v45 = vsel %vm311_vm6, %v312_v35, %v1707_v2  ;;  %v710_v3 = vsel %vm708_vm13, %v1664_v62, 2102212464 }
 0x10d   :  { %v757_v22 = vsel %vm756_vm8, 1, %v1128_v55  ;;  %v758_v21 = vadd.s32 %v752_v42, %v748_v1  ;;  %v468_v27 = vsel %vm466_vm9, %v467_v9, %v1709_v33  ;;  %v733_v44 = vshrl.u32 %v728_v14, 16 }
 0x10e   :  { %v742_v31 = vadd.s32 %v741_v40, %v731_v18  ;;  %v759_v37 = vadd.s32 %v757_v22, %v751_v5  ;;  %v623_v19 = vsel %vm621_vm10, %v622_v28, %v1711_v25  ;;  %v753_v39 = vshrl.u32 %v749_v15, 16 }
 0x10f   :  { %vm760_vm11 = vc.u32 %v758_v21, %v754_v20  ;;  %v314_v12 = vclz %v313_v45  ;;  %v709_v13 = vsel %vm705_vm12, %v689_v56, %v1672_v11  ;;  %v711_v29 = vsel %vm707_vm14, %v1662_v26, %v710_v3 }
 0x110   :  { %v761_v62 = vsel %vm760_vm11, 1, %v1128_v55  ;;  %v469_v50 = vclz %v468_v27  ;;  %v755_v17 = vshrl.u32 %v750_v52, 16  ;;  %v624_v8 = vclz %v623_v19 }
 0x111   :  { %v763_v14 = vadd.s32 %v761_v62, %v759_v37  ;;  %v743_v58 = vadd.s32 %v742_v31, %v733_v44  ;;  %v762_v36 = vadd.s32 %v758_v21, %v754_v20  ;;  %v712_v4 = vsel %vm706_vm15, %v709_v13, %v711_v29 }
 0x112   :  { %v1009_v47 = vadd.s32 4294967294, %v314_v12  ;;  %v1012_v7 = vadd.s32 4294967294, %v469_v50  ;;  %v1015_v11 = vadd.s32 4294967294, %v624_v8  ;;  %v766_v38 = vmul.u32 %v1684_v48, %v712_v4  ;;  %s1067_s27 = spop %1066 }
 0x113   :  { %v764_v57 = vadd.s32 %v763_v14, %v753_v39  ;;  %vm768_vm13 = vc.u32 %v743_v58, %v762_v36  ;;  %s944_s28 = sadd.f32 1e-05, %s1067_s27  ;;  %v302_v9 = vadd.s32 %v1587_v59, %v1594_v49  ;;  %v457_v5 = vadd.s32 %v1618_v0, %v1613_v6 }
 0x114   :  { %vm1010_vm2 = vcmp.lt.s32.totalorder %v1009_v47, 0  ;;  %vm1013_vm4 = vcmp.lt.s32.totalorder %v1012_v7, 0  ;;  %vm1016_vm3 = vcmp.lt.s32.totalorder %v1015_v11, 0  ;;  %v612_v45 = vadd.s32 %v1633_v43, %v1631_v46 }
 0x115   :  { %v765_v23 = vadd.s32 %v764_v57, %v755_v17  ;;  %v317_v41 = vsel %vm1010_vm2, 0, %v1009_v47  ;;  %v472_v15 = vsel %vm1013_vm4, 0, %v1012_v7  ;;  %v627_v60 = vsel %vm1016_vm3, 0, %v1015_v11 }
 0x116   :  { %v322_v1 = vsub.s32 4294967266, %v317_v41  ;;  %v477_v52 = vsub.s32 4294967266, %v472_v15  ;;  %v1741_v42 = vstv %s944_s28  ;;  %v632_v48 = vsub.s32 4294967266, %v627_v60 }
 0x117   :  { %v769_v26 = vadd.s32 1, %v765_v23  ;;  %v318_v18 = vsub.s32 32, %v317_v41  ;;  %1088 = vrcp.f32 %v1741_v42  ;;  %v473_v20 = vsub.s32 32, %v472_v15 }
 0x118   :  { %v323_v40 = vadd.s32 127, %v322_v1  ;;  %v478_v56 = vadd.s32 127, %v477_v52  ;;  %v628_v3 = vsub.s32 32, %v627_v60  ;;  %v633_v22 = vadd.s32 127, %v632_v48 }
 0x119   :  { %v770_v55 = vsel %vm768_vm13, %v769_v26, %v765_v23  ;;  %v319_v27 = vshll.u32 %v1707_v2, %v317_v41  ;;  %v320_v59 = vshrl.u32 %v302_v9, %v318_v18  ;;  %v474_v31 = vshll.u32 %v1709_v33, %v472_v15 }
 0x11a   :  { %v771_v34 = vadd.s32 %v770_v55, %v766_v38  ;;  %v324_v49 = vshll.u32 %v323_v40, 23  ;;  %v475_v6 = vshrl.u32 %v457_v5, %v473_v20  ;;  %v479_v0 = vshll.u32 %v478_v56, 23 }
 0x11b   :  { %v629_v19 = vshll.u32 %v1711_v25, %v627_v60  ;;  %v630_v39 = vshrl.u32 %v612_v45, %v628_v3  ;;  %v634_v12 = vshll.u32 %v633_v22, 23  ;;  %v321_v43 = vor.u32 %v320_v59, %v319_v27 }
 0x11c   :  { %v772_v30 = vadd.s32 536870912, %v771_v34  ;;  %v325_v29 = vor.u32 4788187, %v324_v49  ;;  %v476_v62 = vor.u32 %v475_v6, %v474_v31  ;;  %v480_v50 = vor.u32 4788187, %v479_v0 }
 0x11d   :  { %v1089_v13 = vpop.eup %1088  ;;  %v767_v17 = vadd.s32 %v762_v36, %v743_v58  ;;  %v631_v14 = vor.u32 %v630_v39, %v629_v19  ;;  %v635_v8 = vor.u32 4788187, %v634_v12  ;;  %v328_v25 = vcvt.s32.f32 %v321_v43 }
 0x11e   :  { %v1739_v51 = vshrl.u32 %v772_v30, 30  ;;  %v947_v2 = vmul.f32 %v1089_v13, %v1741_v42  ;;  %v326_v7 = vand.u32 2147483647, %v325_v29  ;;  %v481_v23 = vand.u32 2147483647, %v480_v50 }
 0x11f   :  { %v483_v11 = vcvt.s32.f32 %v476_v62  ;;  %v638_v41 = vcvt.s32.f32 %v631_v14  ;;  %vm952_vm12 = vweird.f32 %v1089_v13  ;;  %v957_v18 = vand.u32 2147483648, %v1741_v42 }
 0x120   :  { %v774_v35 = vshll.u32 %v1739_v51, 30  ;;  %v948_v55 = vsub.f32 1.0, %v947_v2  ;;  %v329_v36 = vmul.f32 %v328_v25, %v326_v7  ;;  %vm951_vm14 = vweird.f32 %v1741_v42 }
 0x121   :  { %v484_v30 = vmul.f32 %v483_v11, %v481_v23  ;;  %vm210_vm15 = vcmp.lt.s32.totalorder %v1212_v10, 0  ;;  %vm953_vm0 = vmor %vm951_vm14, %vm952_vm12  ;;  %v958_v20 = vor.u32 1.1754944e-38, %v957_v18  ;;  %vm365_vm6 = vcmp.lt.s32.totalorder %v1216_v16, 0 }
 0x122   :  { %v775_v28 = vsub.s32 %v771_v34, %v774_v35  ;;  %v636_v34 = vand.u32 2147483647, %v635_v8  ;;  %v949_v48 = vmul.f32 %v1089_v13, %v948_v55  ;;  %v955_v35 = vand.u32 2147483647, %v1741_v42 }
 0x123   :  { %v330_v40 = vxor.u32 2147483648, %v329_v36  ;;  %v485_v56 = vxor.u32 2147483648, %v484_v30  ;;  %vm520_vm8 = vcmp.lt.s32.totalorder %v1220_v24, 0  ;;  %vm675_vm9 = vcmp.lt.s32.totalorder %v1240_v54, 0 }
 0x124   :  { %vm776_vm5 = vcmp.lt.s32.totalorder %v775_v28, 0  ;;  %v777_v21 = vsub.s32 0, %v775_v28  ;;  %v639_v52 = vmul.f32 %v638_v41, %v636_v34  ;;  %v950_v5 = vadd.f32 %v1089_v13, %v949_v48 }
 0x125   :  { %vm956_vm1 = vcmp.eq.f32.partialorder %v955_v35, 8.507059e+37  ;;  %v1921_v27 = vand.u32 2147483647, %v1212_v10  ;;  %v331_v59 = vsel %vm210_vm15, %v330_v40, %v329_v36  ;;  %v1924_v49 = vand.u32 2147483647, %v1216_v16 }
 0x126   :  { %v778_v44 = vsel %vm776_vm5, %v777_v21, %v775_v28  ;;  %v640_v45 = vxor.u32 2147483648, %v639_v52  ;;  %v954_v3 = vsel %vm953_vm0, %v1089_v13, %v950_v5  ;;  %v486_v31 = vsel %vm365_vm6, %v485_v56, %v484_v30 }
 0x127   :  { %v779_v37 = vclz %v778_v44  ;;  %v959_v21 = vsel %vm956_vm1, %v958_v20, %v954_v3  ;;  %vm1764_vm10 = vcmp.le.f32.partialorder %v1921_v27, 0.7853982  ;;  %vm1772_vm11 = vcmp.le.f32.partialorder %v1924_v49, 0.7853982 }
 0x128   :  { %1068 = vpush %v959_v21  ;;  %v1927_v6 = vand.u32 2147483647, %v1220_v24  ;;  %v1789_v19 = vsel %vm1764_vm10, %v1212_v10, %v331_v59  ;;  %vm1793_vm2 = vcmp.le.f32.partialorder %v673_v61, 0.7853982  ;;  %v1802_v13 = vsel %vm1772_vm11, %v1216_v16, %v486_v31  ;;  %v1848_v31 = vpop.f32.mrf.mxu3 }
 0x129   :  { %v1018_v46 = vadd.s32 4294967294, %v779_v37  ;;  %v641_v37 = vsel %vm520_vm8, %v640_v45, %v639_v52  ;;  %v336_v43 = vmul.f32 %v1789_v19, %v1789_v19  ;;  %v491_v29 = vmul.f32 %v1802_v13, %v1802_v13 }
 0x12a   :  { %vm1780_vm13 = vcmp.le.f32.partialorder %v1927_v6, 0.7853982  ;;  %v642_v52 = vsub.s32 4, %v1701_v53  ;;  %v797_v40 = vsub.s32 4, %v1739_v51 }
 0x12b   :  { %vm1019_vm7 = vcmp.lt.s32.totalorder %v1018_v46, 0  ;;  %v499_v2 = vmul.f32 -0.00019511016, %v491_v29  ;;  %v492_v23 = vmul.f32 -0.001358992, %v491_v29 }
 0x12c   :  { %v782_v33 = vsel %vm1019_vm7, 0, %v1018_v46  ;;  %v1807_v46 = vsel %vm1780_vm13, %v1220_v24, %v641_v37  ;;  %v798_v49 = vsel %vm675_vm9, %v797_v40, %v1739_v51 }
 0x12d   :  { %v783_v4 = vsub.s32 32, %v782_v33  ;;  %v784_v57 = vshll.u32 %v775_v28, %v782_v33  ;;  %v787_v47 = vsub.s32 4294967266, %v782_v33  ;;  %v646_v62 = vmul.f32 %v1807_v46, %v1807_v46 }
 0x12e   :  { %v493_v30 = vadd.f32 0.041655596, %v492_v23 }
 0x12f   :  { %v785_v38 = vshrl.u32 %v767_v17, %v783_v4  ;;  %v788_v26 = vadd.s32 127, %v787_v47  ;;  %v344_v17 = vmul.f32 -0.00019511016, %v336_v43  ;;  %v654_v14 = vmul.f32 -0.00019511016, %v646_v62 }
 0x130   :  { %v337_v4 = vmul.f32 -0.001358992, %v336_v43  ;;  %v647_v11 = vmul.f32 -0.001358992, %v646_v62  ;;  %v494_v56 = vmul.f32 %v493_v30, %v491_v29 }
 0x131   :  { %v786_v15 = vor.u32 %v785_v38, %v784_v57  ;;  %v789_v58 = vshll.u32 %v788_v26, 23  ;;  %v345_v33 = vadd.f32 0.008332121, %v344_v17  ;;  %v500_v57 = vadd.f32 0.008332121, %v499_v2 }
 0x132   :  { %v655_v47 = vadd.f32 0.008332121, %v654_v14  ;;  %v332_v38 = vsub.s32 4, %v1695_v63  ;;  %v338_v55 = vadd.f32 0.041655596, %v337_v4  ;;  %v800_v2 = vsel %vm1793_vm2, 0, %v798_v49 }
 0x133   :  { %v790_v60 = vor.u32 4788187, %v789_v58  ;;  %v793_v1 = vcvt.s32.f32 %v786_v15  ;;  %v346_v25 = vmul.f32 %v345_v33, %v336_v43  ;;  %v501_v34 = vmul.f32 %v500_v57, %v491_v29 }
 0x134   :  { %v656_v41 = vmul.f32 %v655_v47, %v646_v62  ;;  %v487_v15 = vsub.s32 4, %v1697_v32  ;;  %v339_v35 = vmul.f32 %v338_v55, %v336_v43  ;;  %v495_v37 = vadd.f32 -0.4999988, %v494_v56 }
 0x135   :  { %v791_v9 = vand.u32 2147483647, %v790_v60  ;;  %v347_v36 = vadd.f32 -0.16666654, %v346_v25  ;;  %v648_v60 = vadd.f32 0.041655596, %v647_v11 }
 0x136   :  { %v657_v18 = vadd.f32 -0.16666654, %v656_v41  ;;  %v488_v20 = vsel %vm365_vm6, %v487_v15, %v1697_v32  ;;  %v340_v21 = vadd.f32 -0.4999988, %v339_v35  ;;  %v817_v23 = vadd.s32 3, %v800_v2 }
 0x137   :  { %v794_v28 = vmul.f32 %v793_v1, %v791_v9  ;;  %v333_v1 = vsel %vm210_vm15, %v332_v38, %v1695_v63  ;;  %v502_v9 = vadd.f32 -0.16666654, %v501_v34  ;;  %v649_v45 = vmul.f32 %v648_v60, %v646_v62 }
 0x138   :  { %v335_v3 = vsel %vm1764_vm10, 0, %v333_v1  ;;  %v643_v63 = vsel %vm520_vm8, %v642_v52, %v1701_v53  ;;  %v658_v59 = vmul.f32 %v657_v18, %v646_v62  ;;  %v490_v32 = vsel %vm1772_vm11, 0, %v488_v20 }
 0x139   :  { %v795_v22 = vxor.u32 2147483648, %v794_v28  ;;  %v503_v27 = vmul.f32 %v502_v9, %v491_v29  ;;  %v645_v53 = vsel %vm1780_vm13, 0, %v643_v63  ;;  %v352_v17 = vadd.s32 3, %v335_v3 }
 0x13a   :  { %v659_v33 = vadd.f32 1.0, %v658_v59  ;;  %v507_v44 = vadd.s32 3, %v490_v32  ;;  %v662_v4 = vadd.s32 3, %v645_v53  ;;  %vm351_vm6 = vweird.f32 %v1212_v10 }
 0x13b   :  { %v796_v12 = vsel %vm675_vm9, %v795_v22, %v794_v28  ;;  %v348_v28 = vmul.f32 %v347_v36, %v336_v43  ;;  %v504_v51 = vadd.f32 1.0, %v503_v27  ;;  %v353_v11 = vand.u32 3, %v352_v17  ;;  %v961_v27 = vld [vmem:[%s1886_s2 + $0x9] sm:$0x1] }
 0x13c   :  { %v1814_v61 = vsel %vm1793_vm2, %v1240_v54, %v796_v12  ;;  %v650_v12 = vadd.f32 -0.4999988, %v649_v45  ;;  %v660_v39 = vmul.f32 %v659_v33, %v1807_v46  ;;  %v508_v55 = vand.u32 3, %v507_v44  ;;  %v874_v46 = vpop.f32.mrf.mxu0 }
 0x13d   :  { %v1822_v50 = vmul.f32 %v1814_v61, %v1814_v61  ;;  %v349_v6 = vadd.f32 1.0, %v348_v28  ;;  %v818_v36 = vand.u32 3, %v817_v23  ;;  %vm355_vm4 = vcmp.eq.s32.totalorder %v353_v11, 0  ;;  %v845_v28 = vpop.f32.mrf.mxu2 }
 0x13e   :  { %v651_v25 = vmul.f32 %v650_v12, %v646_v62  ;;  %v666_v60 = vxor.u32 2147483648, %v660_v39  ;;  %vm358_vm3 = vcmp.eq.s32.totalorder %v353_v11, 2  ;;  %vm510_vm5 = vcmp.eq.s32.totalorder %v508_v55, 0 }
 0x13f   :  { %v809_v8 = vmul.f32 -0.00019511016, %v1822_v50  ;;  %v802_v26 = vmul.f32 -0.001358992, %v1822_v50  ;;  %v350_v47 = vmul.f32 %v349_v6, %v1789_v19  ;;  %v851_v19 = vpop.f32.mrf.mxu3  ;;  %vm820_vm12 = vcmp.eq.s32.totalorder %v818_v36, 0 }
 0x140   :  { %vm354_vm14 = vcmp.lt.s32.totalorder %v353_v11, 2  ;;  %vm513_vm15 = vcmp.eq.s32.totalorder %v508_v55, 2  ;;  %vm823_vm1 = vcmp.eq.s32.totalorder %v818_v36, 2  ;;  %vm509_vm8 = vcmp.lt.s32.totalorder %v508_v55, 2 }
 0x141   :  { %v810_v7 = vadd.f32 0.008332121, %v809_v8  ;;  %v803_v48 = vadd.f32 0.041655596, %v802_v26  ;;  %v341_v8 = vmul.f32 %v340_v21, %v336_v43  ;;  %v505_v26 = vmul.f32 %v504_v51, %v1802_v13 }
 0x142   :  { %v663_v43 = vand.u32 3, %v662_v4  ;;  %v356_v41 = vxor.u32 2147483648, %v350_v47  ;;  %vm819_vm10 = vcmp.lt.s32.totalorder %v818_v36, 2  ;;  %vm506_vm11 = vweird.f32 %v1216_v16  ;;  %v964_v16 = vld [vmem:[%s1886_s2 + $0xa] sm:$0x1] }
 0x143   :  { %v811_v58 = vmul.f32 %v810_v7, %v1822_v50  ;;  %v804_v22 = vmul.f32 %v803_v48, %v1822_v50  ;;  %v496_v7 = vmul.f32 %v495_v37, %v491_v29  ;;  %v342_v38 = vadd.f32 1.0, %v341_v8 }
 0x144   :  { %v511_v30 = vxor.u32 2147483648, %v505_v26  ;;  %vm665_vm7 = vcmp.eq.s32.totalorder %v663_v43, 0  ;;  %vm668_vm0 = vcmp.eq.s32.totalorder %v663_v43, 2  ;;  %vm664_vm9 = vcmp.lt.s32.totalorder %v663_v43, 2  ;;  %v877_v17 = vpop.f32.mrf.mxu0 }
 0x145   :  { %v812_v5 = vadd.f32 -0.16666654, %v811_v58  ;;  %v805_v14 = vadd.f32 -0.4999988, %v804_v22  ;;  %v497_v15 = vadd.f32 1.0, %v496_v7  ;;  %v652_v58 = vadd.f32 1.0, %v651_v25 }
 0x146   :  { %v359_v62 = vxor.u32 2147483648, %v342_v38  ;;  %vm661_vm13 = vweird.f32 %v1220_v24  ;;  %vm816_vm2 = vweird.f32 %v1240_v54 }
 0x147   :  { %v813_v42 = vmul.f32 %v812_v5, %v1822_v50  ;;  %v806_v0 = vmul.f32 %v805_v14, %v1822_v50  ;;  %v357_v50 = vsel %vm355_vm4, %v342_v38, %v356_v41  ;;  %v514_v1 = vxor.u32 2147483648, %v497_v15  ;;  %v854_v10 = vpop.f32.mrf.mxu3 }
 0x148   :  { %v669_v52 = vxor.u32 2147483648, %v652_v58  ;;  %v360_v35 = vsel %vm358_vm3, %v359_v62, %v350_v47  ;;  %v512_v9 = vsel %vm510_vm5, %v497_v15, %v511_v30  ;;  %v667_v18 = vsel %vm665_vm7, %v652_v58, %v666_v60 }
 0x149   :  { %v814_v57 = vadd.f32 1.0, %v813_v42  ;;  %v807_v29 = vadd.f32 1.0, %v806_v0  ;;  %v361_v40 = vsel %vm354_vm14, %v357_v50, %v360_v35  ;;  %v515_v20 = vsel %vm513_vm15, %v514_v1, %v505_v26 }
 0x14a   :  { %v670_v56 = vsel %vm668_vm0, %v669_v52, %v660_v39  ;;  %v516_v45 = vsel %vm509_vm8, %v512_v9, %v515_v20  ;;  %v362_v22 = vsel %vm351_vm6, nan, %v361_v40  ;;  %v965_v14 = vstv %s1299_s21 }
 0x14b   :  { %v815_v34 = vmul.f32 %v814_v57, %v1814_v61  ;;  %v880_v61 = vpop.f32.mrf.mxu1  ;;  %v824_v48 = vxor.u32 2147483648, %v807_v29  ;;  %v671_v3 = vsel %vm664_vm9, %v667_v18, %v670_v56  ;;  %v846_v59 = vadd.f32 %v845_v28, %v362_v22 }
 0x14c   :  { %v517_v49 = vsel %vm506_vm11, nan, %v516_v45  ;;  %v672_v32 = vsel %vm661_vm13, nan, %v671_v3 }
 0x14d   :  { %v821_v13 = vxor.u32 2147483648, %v815_v34  ;;  %v825_v63 = vsel %vm823_vm1, %v824_v48, %v815_v34  ;;  %v849_v6 = vadd.f32 %v1848_v31, %v517_v49  ;;  %v852_v37 = vadd.f32 %v851_v19, %v672_v32 }
 0x14e   :  { %v875_v33 = vadd.f32 %v874_v46, %v846_v59 }
 0x14f   :  { %v822_v5 = vsel %vm820_vm12, %v807_v29, %v821_v13  ;;  %v878_v44 = vadd.f32 %v877_v17, %v849_v6  ;;  %v881_v4 = vadd.f32 %v880_v61, %v852_v37 }
 0x150   :  { %v826_v21 = vsel %vm819_vm10, %v822_v5, %v825_v63 }
 0x151   :  { %v827_v53 = vsel %vm816_vm2, nan, %v826_v21 }
 0x152   :  { %v855_v2 = vadd.f32 %v854_v10, %v827_v53 }
 0x153   :  { %v883_v24 = vpop.f32.mrf.mxu1 }
 0x154   :  { %v884_v57 = vadd.f32 %v883_v24, %v855_v2 }
 0x159   :  { %s1069_s30 = spop %1068 }
 0x15a   :  { %v962_v42 = vstv %s1069_s30 }
 0x15b   :  { %v963_v12 = vmul.f32 %v962_v42, %v961_v27 }
 0x15d   :  { %v966_v8 = vmul.f32 %v965_v14, %v963_v12  ;;  %v968_v51 = vperm.slane %v963_v12, 0 }
 0x15f   :  { %v967_v54 = vsub.f32 %v964_v16, %v966_v8  ;;  %v969_v47 = vmul.f32 %v968_v51, %v875_v33  ;;  %v970_v31 = vmul.f32 %v968_v51, %v878_v44  ;;  %v971_v7 = vmul.f32 %v968_v51, %v881_v4 }
 0x160   :  { %v972_v23 = vmul.f32 %v968_v51, %v884_v57 }
 0x161   :  { %v973_v25 = vperm.slane %v967_v54, 0 }
 0x163   :  { %v974_v11 = vadd.f32 %v973_v25, %v969_v47  ;;  %v975_v0 = vadd.f32 %v973_v25, %v970_v31  ;;  %v976_v38 = vadd.f32 %v973_v25, %v971_v7  ;;  %v977_v26 = vadd.f32 %v973_v25, %v972_v23 }
 0x165   :  { %978 = vst [vmem:[%s1889_s5] sm:$0xff] %v974_v11 }
 0x166   :  { %979 = vst [vmem:[%s1889_s5 + $0x8] sm:$0xff] %v975_v0 }
 0x167   :  { %980 = vst [vmem:[%s1889_s5 + $0x10] sm:$0xff] %v976_v38 }
 0x168   :  { %981 = vst [vmem:[%s1889_s5 + $0x18] sm:$0xff] %v977_v26 }
 0x169   :  { %986 = vsyncpa [#allocation3], 1 }

// kernel: fwd.2
= control target key start
LH: loop header
LB: loop body
LE: loop exit
PB: predicated region body
PF: predicated region fallthrough
CT: control target
= control target key end

     0   :  { %11 = vsyncpa [#allocation3], 0  ;;  %s1043_s21 = smov [#allocation2]   ;;  %s1044_s23 = smov 128   ;;  %s1670_s0 = inlined_call_operand.vmem [shape: f32[32,8], index: 0, kind: input, shape index: {}]   ;;  %s1671_s1 = inlined_call_operand.hbm [shape: f32[256,128], index: 1, kind: input, shape index: {}]   ;;  %s1672_s2 = inlined_call_operand.vmem [shape: f32[12,128], index: 2, kind: input, shape index: {}]   ;;  %s1673_s3 = inlined_call_operand.vmem [shape: f32[9,256], index: 3, kind: input, shape index: {}]   ;;  %s1674_s4 = inlined_call_operand.vmem [shape: f32[32,128], index: 4, kind: output, shape index: {0}]   ;;  %s1675_s5 = inlined_call_operand.vmem [shape: f32[2,128], index: 5, kind: output, shape index: {1}]  }
   0x1   :  { %s18_s20 = sshll.u32 %s1671_s1, 4  ;;  %s20_s22 = sshll.u32 %s1043_s21, 4  ;;  %s19_s20 = int_to_ptr.hbm [resolvable:$true] %s18_s20  ;;  %s21_s22 = int_to_ptr.vmem [resolvable:$true] %s20_s22 }
   0x2   :  { %s1045_s24 = smov 8  }
   0x3   :  { %26 = dma.hbm_to_vmem [thread:$0]  %s19_s20, 4096, %s21_s22, [#allocation3], %s1044_s23, %s1044_s23, %s1045_s24  }
   0x4   :  { %1041 = dma.done.wait [#allocation3], 4096  }
   0x5   :  { %1042 = vsyncadd [#allocation3], 4294963200  ;;  %vm46_vm0 = vcmask 64512   ;;  %v44_v0 = vld [vmem:[%s1673_s3] sm:$0xff]  ;;  %v45_v3 = vld [vmem:[%s1673_s3 + $0x8] sm:$0xff]  ;;  %v1046_v43 = vmov 1.0  }
   0x6   :  { %v180_v1 = vld [vmem:[%s1672_s2] sm:$0xff]  ;;  %74 = vmatpush.msra.mxu0 %v44_v0  ;;  %v163_v4 = vld [vmem:[#allocation2 + $0x78] sm:$0xff]  ;;  %v162_v5 = vld [vmem:[#allocation2 + $0x70] sm:$0xff]  ;;  %103 = vmatpush.msra.mxu1 %v45_v3 }
   0x7   :  { %v40_v2 = vld [vmem:[%s1670_s0] sm:$0xff]  ;;  %198 = vmatpush.msra.mxu2 %v180_v1  ;;  %v161_v6 = vld [vmem:[#allocation2 + $0x68] sm:$0xff]  ;;  %972 = vmatpush.msra.mxu3 %v163_v4  ;;  %v179_v7 = vld [vmem:[#allocation2 + $0xf8] sm:$0xff] }
   0x8   :  { %931 = vmatmul.msk.f32.vlgmr.msra.gmra.mxu0 %vm46_vm0, %v40_v2  ;;  %948 = vmatmul.msk.f32.vlgmr.msra.gmra.mxu2 %vm46_vm0, %v40_v2  ;;  %v178_v8 = vld [vmem:[#allocation2 + $0xf0] sm:$0xff]  ;;  %v160_v9 = vld [vmem:[#allocation2 + $0x60] sm:$0xff]  ;;  %v177_v10 = vld [vmem:[#allocation2 + $0xe8] sm:$0xff] }
   0x9   :  { %832 = vmatpush.msrb.mxu2 %v163_v4  ;;  %935 = vmatmul.msk.f32.vlgmr.msra.gmra.mxu1 %vm46_vm0, %v40_v2  ;;  %v41_v11 = vld [vmem:[%s1670_s0 + $0x8] sm:$0xff]  ;;  %v159_v12 = vld [vmem:[#allocation2 + $0x58] sm:$0xff]  ;;  %v176_v13 = vld [vmem:[#allocation2 + $0xe0] sm:$0xff]  ;;  %v1047_v4 = vmov 2102212464  }
   0xa   :  { %861 = vmatpush.msrb.mxu0 %v179_v7  ;;  %973 = vmatpush.msra.mxu3 %v162_v5  ;;  %v158_v14 = vld [vmem:[#allocation2 + $0x50] sm:$0xff]  ;;  %v175_v15 = vld [vmem:[#allocation2 + $0xd8] sm:$0xff]  ;;  %v157_v16 = vld [vmem:[#allocation2 + $0x48] sm:$0xff] }
   0xb   :  { %833 = vmatpush.msrb.mxu2 %v162_v5  ;;  %988 = vmatpush.msrb.mxu1 %v179_v7  ;;  %v174_v17 = vld [vmem:[#allocation2 + $0xd0] sm:$0xff]  ;;  %v156_v18 = vld [vmem:[#allocation2 + $0x40] sm:$0xff]  ;;  %v155_v20 = vld [vmem:[#allocation2 + $0x38] sm:$0xff] }
   0xc   :  { %862 = vmatpush.msrb.mxu0 %v178_v8  ;;  %974 = vmatpush.msra.mxu3 %v161_v6  ;;  %v42_v19 = vld [vmem:[%s1670_s0 + $0x10] sm:$0xff]  ;;  %v173_v21 = vld [vmem:[#allocation2 + $0xc8] sm:$0xff]  ;;  %v172_v23 = vld [vmem:[#allocation2 + $0xc0] sm:$0xff] }
   0xd   :  { %834 = vmatpush.msrb.mxu2 %v161_v6  ;;  %989 = vmatpush.msrb.mxu1 %v178_v8  ;;  %v154_v22 = vld [vmem:[#allocation2 + $0x30] sm:$0xff]  ;;  %v153_v24 = vld [vmem:[#allocation2 + $0x28] sm:$0xff]  ;;  %v171_v25 = vld [vmem:[#allocation2 + $0xb8] sm:$0xff]  ;;  %v1048_v6 = vmov 920167782  }
   0xe   :  { %863 = vmatpush.msrb.mxu0 %v177_v10  ;;  %975 = vmatpush.msra.mxu3 %v160_v9  ;;  %v152_v26 = vld [vmem:[#allocation2 + $0x20] sm:$0xff]  ;;  %v170_v27 = vld [vmem:[#allocation2 + $0xb0] sm:$0xff]  ;;  %v43_v28 = vld [vmem:[%s1670_s0 + $0x18] sm:$0xff] }
   0xf   :  { %835 = vmatpush.msrb.mxu2 %v160_v9  ;;  %990 = vmatpush.msrb.mxu1 %v177_v10  ;;  %v151_v29 = vld [vmem:[#allocation2 + $0x18] sm:$0xff]  ;;  %v169_v30 = vld [vmem:[#allocation2 + $0xa8] sm:$0xff]  ;;  %v150_v31 = vld [vmem:[#allocation2 + $0x10] sm:$0xff]  ;;  %v1049_v9 = vmov 683565275  }
  0x10   :  { %932 = vmatmul.msk.f32.gmra.mxu0 %vm46_vm0, %v41_v11  ;;  %949 = vmatmul.msk.f32.gmra.mxu2 %vm46_vm0, %v41_v11  ;;  %v149_v32 = vld [vmem:[#allocation2 + $0x8] sm:$0xff]  ;;  %v148_v33 = vld [vmem:[#allocation2] sm:$0xff]  ;;  %v167_v35 = vld [vmem:[#allocation2 + $0x98] sm:$0xff] }
  0x11   :  { %836 = vmatpush.msrb.mxu2 %v159_v12  ;;  %936 = vmatmul.msk.f32.gmra.mxu1 %vm46_vm0, %v41_v11  ;;  %v168_v34 = vld [vmem:[#allocation2 + $0xa0] sm:$0xff]  ;;  %v166_v36 = vld [vmem:[#allocation2 + $0x90] sm:$0xff]  ;;  %v165_v37 = vld [vmem:[#allocation2 + $0x88] sm:$0xff] }
  0x12   :  { %864 = vmatpush.msrb.mxu0 %v176_v13  ;;  %976 = vmatpush.msra.mxu3 %v159_v12  ;;  %v164_v38 = vld [vmem:[#allocation2 + $0x80] sm:$0xff]  ;;  %v939_v39 = vld [vmem:[%s1673_s3 + $0x10] ss:$8 sm:$0x3]  ;;  %v1133_v45 = vld [vmem:[%s1672_s2 + $0x8] ss:$0 sm:$0xff] }
  0x13   :  { %837 = vmatpush.msrb.mxu2 %v158_v14  ;;  %991 = vmatpush.msrb.mxu1 %v176_v13  ;;  %v1124_v40 = vperm.slane %v939_v39, 0  ;;  %v1126_v41 = vperm.slane %v939_v39, 1  ;;  %v1050_v13 = vmov 2475754826  }
  0x14   :  { %865 = vmatpush.msrb.mxu0 %v175_v15  ;;  %977 = vmatpush.msra.mxu3 %v158_v14 }
  0x15   :  { %838 = vmatpush.msrb.mxu2 %v157_v16  ;;  %992 = vmatpush.msrb.mxu1 %v175_v15 }
  0x16   :  { %866 = vmatpush.msrb.mxu0 %v174_v17  ;;  %978 = vmatpush.msra.mxu3 %v157_v16  ;;  %v1051_v16 = vmov 2131351028  }
  0x17   :  { %839 = vmatpush.msrb.mxu2 %v156_v18  ;;  %993 = vmatpush.msrb.mxu1 %v174_v17 }
  0x18   :  { %933 = vmatmul.msk.f32.gmra.mxu0 %vm46_vm0, %v42_v19  ;;  %950 = vmatmul.msk.f32.gmra.mxu2 %vm46_vm0, %v42_v19 }
  0x19   :  { %840 = vmatpush.msrb.mxu2 %v155_v20  ;;  %867 = vmatpush.msrb.mxu0 %v173_v21 }
  0x1a   :  { %937 = vmatmul.msk.f32.gmra.mxu1 %vm46_vm0, %v42_v19  ;;  %979 = vmatpush.msra.mxu3 %v156_v18  ;;  %v1052_v19 = vmov 1326507024  }
  0x1b   :  { %841 = vmatpush.msrb.mxu2 %v154_v22  ;;  %868 = vmatpush.msrb.mxu0 %v172_v23 }
  0x1c   :  { %980 = vmatpush.msra.mxu3 %v155_v20  ;;  %994 = vmatpush.msrb.mxu1 %v173_v21 }
  0x1d   :  { %842 = vmatpush.msrb.mxu2 %v153_v24  ;;  %869 = vmatpush.msrb.mxu0 %v171_v25 }
  0x1e   :  { %981 = vmatpush.msra.mxu3 %v154_v22  ;;  %995 = vmatpush.msrb.mxu1 %v172_v23 }
  0x1f   :  { %843 = vmatpush.msrb.mxu2 %v152_v26  ;;  %870 = vmatpush.msrb.mxu0 %v170_v27 }
  0x20   :  { %934 = vmatmul.msk.f32.gmra.mxu0 %vm46_vm0, %v43_v28  ;;  %951 = vmatmul.msk.f32.gmra.mxu2 %vm46_vm0, %v43_v28 }
  0x21   :  { %844 = vmatpush.msrb.mxu2 %v151_v29  ;;  %982 = vmatpush.msra.mxu3 %v153_v24 }
  0x22   :  { %938 = vmatmul.msk.f32.gmra.mxu1 %vm46_vm0, %v43_v28  ;;  %871 = vmatpush.msrb.mxu0 %v169_v30 }
  0x23   :  { %845 = vmatpush.msrb.mxu2 %v150_v31  ;;  %983 = vmatpush.msra.mxu3 %v152_v26 }
  0x24   :  { %996 = vmatpush.msrb.mxu1 %v171_v25  ;;  %872 = vmatpush.msrb.mxu0 %v168_v34 }
  0x25   :  { %846 = vmatpush.msrb.mxu2 %v149_v32  ;;  %984 = vmatpush.msra.mxu3 %v151_v29 }
  0x26   :  { %997 = vmatpush.msrb.mxu1 %v170_v27  ;;  %873 = vmatpush.msrb.mxu0 %v167_v35 }
  0x27   :  { %985 = vmatpush.msra.mxu3 %v150_v31  ;;  %847 = vmatpush.msrb.mxu2 %v148_v33 }
  0x28   :  { %998 = vmatpush.msrb.mxu1 %v169_v30  ;;  %874 = vmatpush.msrb.mxu0 %v166_v36 }
  0x29   :  { %986 = vmatpush.msra.mxu3 %v149_v32 }
  0x2a   :  { %999 = vmatpush.msrb.mxu1 %v168_v34  ;;  %875 = vmatpush.msrb.mxu0 %v165_v37 }
  0x2b   :  { %987 = vmatpush.msra.mxu3 %v148_v33 }
  0x2c   :  { %1000 = vmatpush.msrb.mxu1 %v167_v35  ;;  %876 = vmatpush.msrb.mxu0 %v164_v38 }
  0x2e   :  { %1001 = vmatpush.msrb.mxu1 %v166_v36 }
  0x30   :  { %1002 = vmatpush.msrb.mxu1 %v165_v37 }
  0x32   :  { %1003 = vmatpush.msrb.mxu1 %v164_v38 }
  0x85   :  { %v76_v42 = vpop.f32.mrf.mxu0 }
  0x86   :  { %vm124_vm1 = vcmp.eq.f32.partialorder %v76_v42, %v1124_v40  ;;  %v105_v44 = vpop.f32.mrf.mxu1 }
  0x87   :  { %964 = vmatmul.msk.f32.vlgmr.msrb.gmra.mxu2 %vm124_vm1, %v1046_v43  ;;  %vm125_vm2 = vcmp.eq.f32.partialorder %v105_v44, %v1126_v41 }
  0x88   :  { %968 = vmatmul.msk.f32.vlgmr.msrb.gmra.mxu0 %vm125_vm2, %v1046_v43 }
  0x8b   :  { %v200_v46 = vpop.f32.mrf.mxu2 }
  0x8c   :  { %v1138_v47 = vadd.f32 %v1133_v45, %v200_v46 }
  0x8d   :  { %v79_v48 = vpop.f32.mrf.mxu0 }
  0x8e   :  { %v215_v49 = vand.u32 2139095040, %v1138_v47  ;;  %vm126_vm3 = vcmp.eq.f32.partialorder %v79_v48, %v1124_v40  ;;  %v108_v50 = vpop.f32.mrf.mxu1  ;;  %v212_v60 = vand.u32 2147483647, %v1138_v47 }
  0x8f   :  { %965 = vmatmul.msk.f32.vlgmr.msra.gmra.mxu3 %vm126_vm3, %v1046_v43  ;;  %vm127_vm4 = vcmp.eq.f32.partialorder %v108_v50, %v1126_v41 }
  0x90   :  { %v216_v51 = vshrl.u32 %v215_v49, 23  ;;  %969 = vmatmul.msk.f32.gmra.mxu0 %vm127_vm4, %v1046_v43  ;;  %v219_v3 = vand.u32 8388607, %v212_v60 }
  0x92   :  { %v952_v52 = vadd.s32 4294967169, %v216_v51  ;;  %v220_v27 = vor.u32 8388608, %v219_v3 }
  0x93   :  { %v203_v53 = vpop.f32.mrf.mxu2 }
  0x94   :  { %v222_v54 = vadd.s32 1, %v952_v52  ;;  %v1146_v55 = vadd.f32 %v1133_v45, %v203_v53  ;;  %v1186_v37 = vshll.u32 %v220_v27, 8 }
  0x95   :  { %v82_v56 = vpop.f32.mrf.mxu0 }
  0x96   :  { %vm223_vm5 = vcmp.gt.s32.totalorder %v222_v54, 0  ;;  %v370_v57 = vand.u32 2139095040, %v1146_v55  ;;  %vm128_vm6 = vcmp.eq.f32.partialorder %v82_v56, %v1124_v40  ;;  %v261_v49 = vand.u32 65535, %v1186_v37 }
  0x97   :  { %v224_v58 = vsel %vm223_vm5, %v222_v54, 0  ;;  %966 = vmatmul.msk.f32.gmra.mxu3 %vm128_vm6, %v1046_v43  ;;  %v111_v59 = vpop.f32.mrf.mxu1  ;;  %v262_v50 = vshrl.u32 %v1186_v37, 16 }
  0x98   :  { %v226_v61 = vand.u32 31, %v224_v58  ;;  %v371_v62 = vshrl.u32 %v370_v57, 23  ;;  %vm129_vm7 = vcmp.eq.f32.partialorder %v111_v59, %v1126_v41  ;;  %v1154_v0 = vshrl.u32 %v224_v58, 5 }
  0x99   :  { %970 = vmatmul.msk.f32.vlgmr.msrb.gmra.mxu1 %vm129_vm7, %v1046_v43 }
  0x9a   :  { %v227_v63 = vsub.s32 32, %v226_v61  ;;  %v955_v1 = vadd.s32 4294967169, %v371_v62  ;;  %v238_v5 = vshll.u32 %v1047_v4, %v226_v61  ;;  %v229_v10 = vshll.u32 %v1049_v9, %v226_v61 }
  0x9b   :  { %v206_v2 = vpop.f32.mrf.mxu2  ;;  %v232_v15 = vshll.u32 %v1050_v13, %v226_v61  ;;  %v241_v18 = vshll.u32 %v1048_v6, %v226_v61  ;;  %v235_v23 = vshll.u32 %v1051_v16, %v226_v61  ;;  %vm247_vm10 = vcmp.lt.s32.totalorder %v1154_v0, 4 }
  0x9c   :  { %v239_v7 = vshrl.u32 %v1048_v6, %v227_v63  ;;  %v1161_v8 = vadd.f32 %v1133_v45, %v206_v2  ;;  %v377_v11 = vadd.s32 1, %v955_v1  ;;  %v230_v14 = vshrl.u32 %v1050_v13, %v227_v63 }
  0x9d   :  { %v85_v12 = vpop.f32.mrf.mxu0  ;;  %v233_v17 = vshrl.u32 %v1051_v16, %v227_v63  ;;  %v242_v20 = vshrl.u32 %v1052_v19, %v227_v63  ;;  %v236_v24 = vshrl.u32 %v1047_v4, %v227_v63  ;;  %vm244_vm12 = vcmp.lt.s32.totalorder %v1154_v0, 1 }
  0x9e   :  { %v525_v21 = vand.u32 2139095040, %v1161_v8  ;;  %vm378_vm8 = vcmp.gt.s32.totalorder %v377_v11, 0  ;;  %vm130_vm9 = vcmp.eq.f32.partialorder %v85_v12, %v1124_v40  ;;  %v240_v25 = vor.u32 %v239_v7, %v238_v5 }
  0x9f   :  { %v114_v22 = vpop.f32.mrf.mxu1  ;;  %v379_v26 = vsel %vm378_vm8, %v377_v11, 0  ;;  %967 = vmatmul.msk.f32.gmra.mxu3 %vm130_vm9, %v1046_v43  ;;  %v231_v29 = vor.u32 %v230_v14, %v229_v10  ;;  %v234_v30 = vor.u32 %v233_v17, %v232_v15  ;;  %v243_v31 = vor.u32 %v242_v20, %v241_v18 }
  0xa0   :  { %v526_v28 = vshrl.u32 %v525_v21, 23  ;;  %vm131_vm11 = vcmp.eq.f32.partialorder %v114_v22, %v1126_v41  ;;  %v1178_v32 = vand.u32 31, %v379_v26  ;;  %v237_v34 = vor.u32 %v236_v24, %v235_v23 }
  0xa1   :  { %971 = vmatmul.msk.f32.gmra.mxu1 %vm131_vm11, %v1046_v43  ;;  %v253_v35 = vsel %vm247_vm10, %v240_v25, 920167782  ;;  %vm246_vm13 = vcmp.lt.s32.totalorder %v1154_v0, 3  ;;  %vm245_vm14 = vcmp.lt.s32.totalorder %v1154_v0, 2  ;;  %v252_v39 = vsel %vm244_vm12, %v231_v29, %v234_v30 }
  0xa2   :  { %v958_v38 = vadd.s32 4294967169, %v526_v28  ;;  %v257_v40 = vsel %vm247_vm10, %v243_v31, 1326507024  ;;  %v228_v42 = vshrl.u32 %v1049_v9, %v227_v63  ;;  %v367_v43 = vand.u32 2147483647, %v1146_v55 }
  0xa3   :  { %v209_v33 = vpop.f32.mrf.mxu2  ;;  %v1197_v44 = vsub.s32 32, %v1178_v32  ;;  %v249_v52 = vsel %vm247_vm10, %v237_v34, 2102212464  ;;  %v256_v53 = vsel %vm244_vm12, %v234_v30, %v237_v34  ;;  %v258_v54 = vsel %vm246_vm13, %v240_v25, %v257_v40 }
  0xa4   :  { %v1183_v36 = vadd.f32 %v1133_v45, %v209_v33  ;;  %v254_v45 = vsel %vm246_vm13, %v237_v34, %v253_v35  ;;  %v532_v51 = vadd.s32 1, %v958_v38  ;;  %v1211_v56 = vshrl.u32 %v379_v26, 5 }
  0xa5   :  { %v255_v48 = vsel %vm245_vm14, %v252_v39, %v254_v45  ;;  %v393_v57 = vshll.u32 %v1047_v4, %v1178_v32  ;;  %v248_v58 = vsel %vm244_vm12, %v228_v42, %v231_v29  ;;  %v1219_v59 = vand.u32 8388607, %v367_v43 }
  0xa6   :  { %v680_v41 = vand.u32 2139095040, %v1183_v36  ;;  %v394_v61 = vshrl.u32 %v1048_v6, %v1197_v44  ;;  %v259_v63 = vsel %vm245_vm14, %v256_v53, %v258_v54  ;;  %v286_v1 = vshrl.u32 %v255_v48, 16 }
  0xa7   :  { %v250_v2 = vsel %vm246_vm13, %v234_v30, %v249_v52  ;;  %v263_v3 = vand.u32 65535, %v259_v63  ;;  %v264_v5 = vshrl.u32 %v259_v63, 16  ;;  %v285_v7 = vand.u32 65535, %v255_v48 }
  0xa8   :  { %v681_v46 = vshrl.u32 %v680_v41, 23  ;;  %v396_v10 = vshll.u32 %v1048_v6, %v1178_v32  ;;  %v397_v11 = vshrl.u32 %v1052_v19, %v1197_v44  ;;  %vm533_vm15 = vcmp.gt.s32.totalorder %v532_v51, 0 }
  0xa9   :  { %vm402_vm0 = vcmp.lt.s32.totalorder %v1211_v56, 4  ;;  %v265_v14 = vmul.u32 %v263_v3, %v261_v49  ;;  %v266_v15 = vmul.u32 %v264_v5, %v261_v49  ;;  %v288_v17 = vmul.u32 %v286_v1, %v261_v49 }
  0xaa   :  { %v961_v62 = vadd.s32 4294967169, %v681_v46  ;;  %v1232_v18 = vor.u32 %v394_v61, %v393_v57  ;;  %v1236_v20 = vsel %vm245_vm14, %v248_v58, %v250_v2  ;;  %v267_v21 = vmul.u32 %v263_v3, %v262_v50 }
  0xab   :  { %v534_v22 = vsel %vm533_vm15, %v532_v51, 0  ;;  %v269_v24 = vshll.u32 %v266_v15, 16  ;;  %v289_v25 = vmul.u32 %v285_v7, %v262_v50  ;;  %v398_v26 = vor.u32 %v397_v11, %v396_v10 }
  0xac   :  { %v687_v12 = vadd.s32 1, %v961_v62  ;;  %v268_v28 = vmul.u32 %v264_v5, %v262_v50  ;;  %v271_v29 = vshll.u32 %v267_v21, 16  ;;  %v287_v31 = vmul.u32 %v285_v7, %v261_v49 }
  0xad   :  { %vm273_vm2 = vc.u32 %v265_v14, %v269_v24  ;;  %v275_v30 = vadd.s32 %v269_v24, %v265_v14  ;;  %v291_v33 = vshll.u32 %v288_v17, 16  ;;  %v1243_v34 = vshrl.u32 %v534_v22, 5 }
  0xae   :  { %vm688_vm1 = vcmp.gt.s32.totalorder %v687_v12, 0  ;;  %v1245_v0 = vand.u32 31, %v534_v22  ;;  %v1053_v39 = vmov 0   ;;  %v290_v41 = vmul.u32 %v286_v1, %v262_v50 }
  0xaf   :  { %v1238_v23 = vsel %vm688_vm1, %v687_v12, 0  ;;  %v274_v40 = vsel %vm273_vm2, 1, %v1053_v39  ;;  %vm277_vm3 = vc.u32 %v275_v30, %v271_v29  ;;  %v293_v42 = vshll.u32 %v289_v25, 16 }
  0xb0   :  { %v1241_v27 = vand.u32 31, %v1238_v23  ;;  %v270_v46 = vshrl.u32 %v266_v15, 16  ;;  %v276_v48 = vadd.s32 %v274_v40, %v268_v28  ;;  %v278_v49 = vsel %vm277_vm3, 1, %v1053_v39 }
  0xb1   :  { %v408_v51 = vsel %vm402_vm0, %v1232_v18, 920167782  ;;  %v412_v52 = vsel %vm402_vm0, %v398_v26, 1326507024  ;;  %vm295_vm4 = vc.u32 %v287_v31, %v291_v33  ;;  %v297_v53 = vadd.s32 %v291_v33, %v287_v31 }
  0xb2   :  { %v1248_v35 = vsub.s32 32, %v1241_v27  ;;  %v1252_v38 = vshll.u32 %v1048_v6, %v1241_v27  ;;  %v272_v54 = vshrl.u32 %v267_v21, 16  ;;  %v280_v57 = vadd.s32 %v278_v49, %v276_v48 }
  0xb3   :  { %v296_v58 = vsel %vm295_vm4, 1, %v1053_v39  ;;  %v1269_v61 = vsub.s32 32, %v1245_v0  ;;  %v292_v62 = vshrl.u32 %v288_v17, 16  ;;  %vm299_vm5 = vc.u32 %v297_v53, %v293_v42 }
  0xb4   :  { %v1257_v45 = vshrl.u32 %v1052_v19, %v1248_v35  ;;  %v298_v63 = vadd.s32 %v296_v58, %v290_v41  ;;  %v548_v1 = vshll.u32 %v1047_v4, %v1245_v0  ;;  %v281_v2 = vadd.s32 %v280_v57, %v270_v46 }
  0xb5   :  { %v294_v3 = vshrl.u32 %v289_v25, 16  ;;  %v300_v5 = vsel %vm299_vm5, 1, %v1053_v39  ;;  %v1274_v7 = vadd.s32 %v297_v53, %v293_v42  ;;  %v375_v11 = vor.u32 8388608, %v1219_v59 }
  0xb6   :  { %v708_v50 = vor.u32 %v1257_v45, %v1252_v38  ;;  %v302_v10 = vadd.s32 %v300_v5, %v298_v63  ;;  %v384_v12 = vshll.u32 %v1049_v9, %v1178_v32  ;;  %v1279_v14 = vadd.s32 %v281_v2, %v272_v54 }
  0xb7   :  { %v385_v15 = vshrl.u32 %v1050_v13, %v1197_v44  ;;  %v387_v17 = vshll.u32 %v1050_v13, %v1178_v32  ;;  %v388_v21 = vshrl.u32 %v1051_v16, %v1197_v44  ;;  %v390_v24 = vshll.u32 %v1051_v16, %v1178_v32 }
  0xb8   :  { %v303_v22 = vadd.s32 %v302_v10, %v292_v62  ;;  %v391_v59 = vshrl.u32 %v1047_v4, %v1197_v44  ;;  %vm399_vm6 = vcmp.lt.s32.totalorder %v1211_v56, 1  ;;  %v1294_v25 = vshll.u32 %v1048_v6, %v1245_v0 }
  0xb9   :  { %v305_v26 = vmul.u32 %v1186_v37, %v1236_v20  ;;  %v386_v28 = vor.u32 %v385_v15, %v384_v12  ;;  %v389_v29 = vor.u32 %v388_v21, %v387_v17  ;;  %vm400_vm7 = vcmp.lt.s32.totalorder %v1211_v56, 2 }
  0xba   :  { %v304_v30 = vadd.s32 %v303_v22, %v294_v3  ;;  %v392_v31 = vor.u32 %v391_v59, %v390_v24  ;;  %vm401_vm8 = vcmp.lt.s32.totalorder %v1211_v56, 3  ;;  %vm307_vm9 = vc.u32 %v1279_v14, %v1274_v7 }
  0xbb   :  { %v407_v32 = vsel %vm399_vm6, %v386_v28, %v389_v29  ;;  %v413_v33 = vsel %vm401_vm8, %v1232_v18, %v412_v52  ;;  %v1307_v40 = vshll.u32 %v375_v11, 8  ;;  %v549_v37 = vshrl.u32 %v1048_v6, %v1269_v61 }
  0xbc   :  { %v308_v20 = vadd.s32 1, %v304_v30  ;;  %v409_v41 = vsel %vm401_vm8, %v392_v31, %v408_v51  ;;  %v411_v42 = vsel %vm399_vm6, %v389_v29, %v392_v31  ;;  %v1317_v46 = vshrl.u32 %v1052_v19, %v1269_v61 }
  0xbd   :  { %v410_v48 = vsel %vm400_vm7, %v407_v32, %v409_v41  ;;  %v414_v18 = vsel %vm400_vm7, %v411_v42, %v413_v33  ;;  %v416_v49 = vand.u32 65535, %v1307_v40  ;;  %v417_v53 = vshrl.u32 %v1307_v40, 16 }
  0xbe   :  { %v309_v52 = vsel %vm307_vm9, %v308_v20, %v304_v30  ;;  %v418_v54 = vand.u32 65535, %v414_v18  ;;  %v419_v57 = vshrl.u32 %v414_v18, 16  ;;  %v440_v58 = vand.u32 65535, %v410_v48 }
  0xbf   :  { %v310_v51 = vadd.s32 %v309_v52, %v305_v26  ;;  %v441_v62 = vshrl.u32 %v410_v48, 16  ;;  %v1325_v63 = vor.u32 %v549_v37, %v548_v1  ;;  %vm557_vm10 = vcmp.lt.s32.totalorder %v1243_v34, 4 }
  0xc0   :  { %v383_v19 = vshrl.u32 %v1049_v9, %v1197_v44  ;;  %v422_v2 = vmul.u32 %v418_v54, %v417_v53  ;;  %v553_v3 = vor.u32 %v1317_v46, %v1294_v25  ;;  %v420_v10 = vmul.u32 %v418_v54, %v416_v49 }
  0xc1   :  { %v311_v5 = vadd.s32 536870912, %v310_v51  ;;  %v421_v11 = vmul.u32 %v419_v57, %v416_v49  ;;  %v404_v12 = vsel %vm402_vm0, %v392_v31, 2102212464  ;;  %v442_v15 = vmul.u32 %v440_v58, %v416_v49 }
  0xc2   :  { %v443_v17 = vmul.u32 %v441_v62, %v416_v49  ;;  %v444_v21 = vmul.u32 %v440_v58, %v417_v53  ;;  %vm214_vm11 = vcmp.lt.s32.totalorder %v1138_v47, 0  ;;  %v423_v22 = vmul.u32 %v419_v57, %v417_v53 }
  0xc3   :  { %v312_v1 = vshrl.u32 %v311_v5, 30  ;;  %v424_v24 = vshll.u32 %v421_v11, 16  ;;  %v426_v59 = vshll.u32 %v422_v2, 16  ;;  %v1338_v44 = vsel %vm557_vm10, %v1325_v63, 920167782 }
  0xc4   :  { %v403_v25 = vsel %vm399_vm6, %v383_v19, %v386_v28  ;;  %v446_v26 = vshll.u32 %v443_v17, 16  ;;  %v448_v30 = vshll.u32 %v444_v21, 16  ;;  %v405_v32 = vsel %vm401_vm8, %v389_v29, %v404_v12 }
  0xc5   :  { %v313_v31 = vshll.u32 %v312_v1, 30  ;;  %vm428_vm12 = vc.u32 %v420_v10, %v424_v24  ;;  %v430_v33 = vadd.s32 %v424_v24, %v420_v10  ;;  %vm1346_vm13 = vcmp.le.f32.partialorder %v212_v60, 0.7853982 }
  0xc6   :  { %v429_v20 = vsel %vm428_vm12, 1, %v1053_v39  ;;  %v445_v41 = vmul.u32 %v441_v62, %v417_v53  ;;  %vm450_vm14 = vc.u32 %v442_v15, %v446_v26  ;;  %v452_v42 = vadd.s32 %v446_v26, %v442_v15 }
  0xc7   :  { %v1351_v28 = vsub.s32 %v310_v51, %v313_v31  ;;  %v425_v46 = vshrl.u32 %v421_v11, 16  ;;  %v431_v48 = vadd.s32 %v429_v20, %v423_v22  ;;  %vm432_vm15 = vc.u32 %v430_v33, %v426_v59 }
  0xc8   :  { %v336_v18 = vsub.s32 4, %v312_v1  ;;  %v433_v29 = vsel %vm432_vm15, 1, %v1053_v39  ;;  %v451_v49 = vsel %vm450_vm14, 1, %v1053_v39  ;;  %vm454_vm0 = vc.u32 %v452_v42, %v448_v30 }
  0xc9   :  { %vm315_vm1 = vcmp.lt.s32.totalorder %v1351_v28, 0  ;;  %v316_v60 = vsub.s32 0, %v1351_v28  ;;  %v427_v52 = vshrl.u32 %v422_v2, 16  ;;  %v435_v54 = vadd.s32 %v433_v29, %v431_v48 }
  0xca   :  { %v406_v53 = vsel %vm400_vm7, %v403_v25, %v405_v32  ;;  %v447_v51 = vshrl.u32 %v443_v17, 16  ;;  %v453_v57 = vadd.s32 %v451_v49, %v445_v41  ;;  %v455_v58 = vsel %vm454_vm0, 1, %v1053_v39 }
  0xcb   :  { %v317_v62 = vsel %vm315_vm1, %v316_v60, %v1351_v28  ;;  %v436_v19 = vadd.s32 %v435_v54, %v425_v46  ;;  %v449_v5 = vshrl.u32 %v444_v21, 16  ;;  %v522_v10 = vand.u32 2147483647, %v1161_v8 }
  0xcc   :  { %v318_v11 = vclz %v317_v62  ;;  %v337_v12 = vsel %vm214_vm11, %v336_v18, %v312_v1  ;;  %v1364_v15 = vadd.s32 %v452_v42, %v448_v30  ;;  %v457_v2 = vadd.s32 %v455_v58, %v453_v57 }
  0xcd   :  { %v567_v56 = vsel %vm557_vm10, %v553_v3, 1326507024  ;;  %v306_v17 = vadd.s32 %v1274_v7, %v1279_v14  ;;  %v1370_v22 = vadd.s32 %v436_v19, %v427_v52  ;;  %v539_v21 = vshll.u32 %v1049_v9, %v1245_v0 }
  0xce   :  { %v953_v24 = vadd.s32 4294967294, %v318_v11  ;;  %v458_v59 = vadd.s32 %v457_v2, %v447_v51  ;;  %v460_v25 = vmul.u32 %v1307_v40, %v406_v53  ;;  %v540_v1 = vshrl.u32 %v1050_v13, %v1269_v61 }
  0xcf   :  { %v339_v26 = vsel %vm1346_vm13, 0, %v337_v12  ;;  %v529_v3 = vand.u32 8388607, %v522_v10  ;;  %v542_v7 = vshll.u32 %v1050_v13, %v1245_v0  ;;  %v543_v14 = vshrl.u32 %v1051_v16, %v1269_v61 }
  0xd0   :  { %vm954_vm2 = vcmp.lt.s32.totalorder %v953_v24, 0  ;;  %v459_v30 = vadd.s32 %v458_v59, %v449_v5  ;;  %vm462_vm3 = vc.u32 %v1370_v22, %v1364_v15  ;;  %v545_v40 = vshll.u32 %v1051_v16, %v1245_v0 }
  0xd1   :  { %v321_v31 = vsel %vm954_vm2, 0, %v953_v24  ;;  %v541_v32 = vor.u32 %v540_v1, %v539_v21  ;;  %v544_v33 = vor.u32 %v543_v14, %v542_v7  ;;  %v546_v20 = vshrl.u32 %v1047_v4, %v1269_v61 }
  0xd2   :  { %v322_v41 = vsub.s32 32, %v321_v31  ;;  %v326_v42 = vsub.s32 4294967266, %v321_v31  ;;  %v463_v46 = vadd.s32 1, %v459_v30  ;;  %vm554_vm4 = vcmp.lt.s32.totalorder %v1243_v34, 1 }
  0xd3   :  { %v323_v48 = vshll.u32 %v1351_v28, %v321_v31  ;;  %v530_v18 = vor.u32 8388608, %v529_v3  ;;  %v547_v29 = vor.u32 %v546_v20, %v545_v40  ;;  %vm556_vm5 = vcmp.lt.s32.totalorder %v1243_v34, 3 }
  0xd4   :  { %v324_v49 = vshrl.u32 %v306_v17, %v322_v41  ;;  %v327_v60 = vadd.s32 127, %v326_v42  ;;  %v464_v0 = vsel %vm462_vm3, %v463_v46, %v459_v30  ;;  %vm555_vm6 = vcmp.lt.s32.totalorder %v1243_v34, 2 }
  0xd5   :  { %v465_v52 = vadd.s32 %v464_v0, %v460_v25  ;;  %v562_v54 = vsel %vm554_vm4, %v541_v32, %v544_v33  ;;  %v564_v28 = vsel %vm556_vm5, %v547_v29, %v1338_v44  ;;  %v566_v53 = vsel %vm554_vm4, %v544_v33, %v547_v29 }
  0xd6   :  { %v703_v51 = vshll.u32 %v1047_v4, %v1241_v27  ;;  %v704_v57 = vshrl.u32 %v1048_v6, %v1248_v35  ;;  %v325_v58 = vor.u32 %v324_v49, %v323_v48  ;;  %v328_v62 = vshll.u32 %v327_v60, 23 }
  0xd7   :  { %v1410_v19 = vshrl.u32 %v1238_v23, 5  ;;  %v466_v5 = vadd.s32 536870912, %v465_v52  ;;  %v568_v11 = vsel %vm556_vm5, %v1325_v63, %v567_v56  ;;  %v1415_v44 = vshll.u32 %v530_v18, 8 }
  0xd8   :  { %v329_v12 = vor.u32 4788187, %v328_v62  ;;  %v356_v2 = vadd.s32 3, %v339_v26  ;;  %v565_v17 = vsel %vm555_vm6, %v562_v54, %v564_v28  ;;  %v569_v6 = vsel %vm555_vm6, %v566_v53, %v568_v11 }
  0xd9   :  { %v1421_v21 = vshrl.u32 %v466_v5, 30  ;;  %v571_v23 = vand.u32 65535, %v1415_v44  ;;  %v572_v24 = vshrl.u32 %v1415_v44, 16  ;;  %v573_v59 = vand.u32 65535, %v569_v6 }
  0xda   :  { %v1425_v25 = vor.u32 %v704_v57, %v703_v51  ;;  %v330_v63 = vand.u32 2147483647, %v329_v12  ;;  %v332_v56 = vcvt.s32.f32 %v325_v58  ;;  %v574_v1 = vshrl.u32 %v569_v6, 16 }
  0xdb   :  { %v468_v26 = vshll.u32 %v1421_v21, 30  ;;  %v538_v3 = vshrl.u32 %v1049_v9, %v1269_v61  ;;  %v559_v7 = vsel %vm557_vm10, %v547_v29, 2102212464  ;;  %v1432_v14 = vmul.u32 %v573_v59, %v572_v24 }
  0xdc   :  { %v333_v30 = vmul.f32 %v332_v56, %v330_v63  ;;  %v575_v40 = vmul.u32 %v573_v59, %v571_v23  ;;  %v576_v31 = vmul.u32 %v574_v1, %v571_v23  ;;  %v596_v20 = vshrl.u32 %v565_v17, 16 }
  0xdd   :  { %v1434_v41 = vand.u32 3, %v356_v2  ;;  %v461_v42 = vadd.s32 %v1364_v15, %v1370_v22  ;;  %v1438_v46 = vsub.s32 %v465_v52, %v468_v26  ;;  %v595_v48 = vand.u32 65535, %v565_v17 }
  0xde   :  { %v334_v18 = vxor.u32 2147483648, %v333_v30  ;;  %v578_v49 = vmul.u32 %v574_v1, %v572_v24  ;;  %v579_v61 = vshll.u32 %v576_v31, 16  ;;  %v581_v60 = vshll.u32 %v1432_v14, 16 }
  0xdf   :  { %vm470_vm7 = vcmp.lt.s32.totalorder %v1438_v46, 0  ;;  %v471_v29 = vsub.s32 0, %v1438_v46  ;;  %v558_v0 = vsel %vm554_vm4, %v538_v3, %v541_v32  ;;  %v560_v54 = vsel %vm556_vm5, %v544_v33, %v559_v7 }
  0xe0   :  { %v335_v15 = vsel %vm214_vm11, %v334_v18, %v333_v30  ;;  %vm583_vm8 = vc.u32 %v575_v40, %v579_v61  ;;  %v585_v22 = vadd.s32 %v579_v61, %v575_v40  ;;  %v598_v52 = vmul.u32 %v596_v20, %v571_v23 }
  0xe1   :  { %v1452_v28 = vsel %vm1346_vm13, %v1138_v47, %v335_v15  ;;  %v472_v53 = vsel %vm470_vm7, %v471_v29, %v1438_v46  ;;  %v584_v51 = vsel %vm583_vm8, 1, %v1053_v39  ;;  %v1456_v57 = vmul.u32 %v595_v48, %v572_v24 }
  0xe2   :  { %v340_v32 = vmul.f32 %v1452_v28, %v1452_v28  ;;  %v473_v33 = vclz %v472_v53  ;;  %v586_v58 = vadd.s32 %v584_v51, %v578_v49  ;;  %vm587_vm9 = vc.u32 %v585_v22, %v581_v60 }
  0xe3   :  { %v1462_v62 = vsel %vm555_vm6, %v558_v0, %v560_v54  ;;  %v580_v5 = vshrl.u32 %v576_v31, 16  ;;  %v588_v37 = vsel %vm587_vm9, 1, %v1053_v39  ;;  %v597_v11 = vmul.u32 %v595_v48, %v571_v23 }
  0xe4   :  { %v341_v12 = vmul.f32 -0.001358992, %v340_v32  ;;  %v348_v2 = vmul.f32 -0.00019511016, %v340_v32  ;;  %v956_v17 = vadd.s32 4294967294, %v473_v33  ;;  %v590_v6 = vadd.s32 %v588_v37, %v586_v58 }
  0xe5   :  { %v491_v59 = vsub.s32 4, %v1421_v21  ;;  %v582_v63 = vshrl.u32 %v1432_v14, 16  ;;  %v601_v56 = vshll.u32 %v598_v52, 16  ;;  %v603_v1 = vshll.u32 %v1456_v57, 16 }
  0xe6   :  { %vm369_vm10 = vcmp.lt.s32.totalorder %v1146_v55, 0  ;;  %v342_v34 = vadd.f32 0.041655596, %v341_v12  ;;  %v349_v26 = vadd.f32 0.008332121, %v348_v2  ;;  %vm957_vm11 = vcmp.lt.s32.totalorder %v956_v17, 0 }
  0xe7   :  { %v600_v3 = vmul.u32 %v596_v20, %v572_v24  ;;  %v476_v7 = vsel %vm957_vm11, 0, %v956_v17  ;;  %v591_v30 = vadd.s32 %v590_v6, %v580_v5  ;;  %vm605_vm12 = vc.u32 %v597_v11, %v601_v56 }
  0xe8   :  { %v607_v23 = vadd.s32 %v601_v56, %v597_v11  ;;  %v343_v40 = vmul.f32 %v342_v34, %v340_v32  ;;  %v350_v31 = vmul.f32 %v349_v26, %v340_v32  ;;  %v477_v48 = vsub.s32 32, %v476_v7 }
  0xe9   :  { %v602_v18 = vshrl.u32 %v598_v52, 16  ;;  %v481_v49 = vsub.s32 4294967266, %v476_v7  ;;  %v604_v14 = vshrl.u32 %v1456_v57, 16  ;;  %v606_v61 = vsel %vm605_vm12, 1, %v1053_v39 }
  0xea   :  { %vm609_vm13 = vc.u32 %v607_v23, %v603_v1  ;;  %v344_v60 = vadd.f32 -0.4999988, %v343_v40  ;;  %v351_v29 = vadd.f32 -0.16666654, %v350_v31  ;;  %v479_v0 = vshrl.u32 %v461_v42, %v477_v48 }
  0xeb   :  { %v608_v54 = vadd.s32 %v606_v61, %v600_v3  ;;  %vm712_vm14 = vcmp.lt.s32.totalorder %v1410_v19, 4  ;;  %v478_v24 = vshll.u32 %v1438_v46, %v476_v7  ;;  %v482_v20 = vadd.s32 127, %v481_v49 }
  0xec   :  { %v1473_v15 = vadd.s32 %v591_v30, %v582_v63  ;;  %v610_v22 = vsel %vm609_vm13, 1, %v1053_v39  ;;  %v345_v52 = vmul.f32 %v344_v60, %v340_v32  ;;  %v352_v53 = vmul.f32 %v351_v29, %v340_v32 }
  0xed   :  { %v1476_v51 = vadd.s32 %v607_v23, %v603_v1  ;;  %v612_v57 = vadd.s32 %v610_v22, %v608_v54  ;;  %vm355_vm15 = vweird.f32 %v1138_v47  ;;  %vm358_vm0 = vcmp.lt.s32.totalorder %v1434_v41, 2 }
  0xee   :  { %v480_v42 = vor.u32 %v479_v0, %v478_v24  ;;  %v483_v33 = vshll.u32 %v482_v20, 23  ;;  %v677_v58 = vand.u32 2147483647, %v1183_v36  ;;  %v346_v5 = vadd.f32 1.0, %v345_v52 }
  0xef   :  { %v353_v46 = vadd.f32 1.0, %v352_v53  ;;  %vm359_vm1 = vcmp.eq.s32.totalorder %v1434_v41, 0  ;;  %vm1484_vm2 = vcmp.le.f32.partialorder %v367_v43, 0.7853982  ;;  %v613_v32 = vadd.s32 %v612_v57, %v602_v18 }
  0xf0   :  { %vm362_vm3 = vcmp.eq.s32.totalorder %v1434_v41, 2  ;;  %v484_v11 = vor.u32 4788187, %v483_v33  ;;  %v492_v12 = vsel %vm369_vm10, %v491_v59, %v1421_v21  ;;  %v615_v2 = vmul.u32 %v1415_v44, %v1462_v62 }
  0xf1   :  { %v354_v17 = vmul.f32 %v353_v46, %v1452_v28  ;;  %v363_v6 = vxor.u32 2147483648, %v346_v5  ;;  %v614_v63 = vadd.s32 %v613_v32, %v604_v14  ;;  %vm617_vm4 = vc.u32 %v1473_v15, %v1476_v51 }
  0xf2   :  { %v485_v43 = vand.u32 2147483647, %v484_v11  ;;  %v487_v56 = vcvt.s32.f32 %v480_v42  ;;  %v684_v1 = vand.u32 8388607, %v677_v58  ;;  %v697_v34 = vshll.u32 %v1050_v13, %v1241_v27 }
  0xf3   :  { %v360_v26 = vxor.u32 2147483648, %v354_v17  ;;  %v618_v21 = vadd.s32 1, %v614_v63  ;;  %v694_v44 = vshll.u32 %v1049_v9, %v1241_v27  ;;  %v698_v28 = vshrl.u32 %v1051_v16, %v1248_v35 }
  0xf4   :  { %v488_v62 = vmul.f32 %v487_v56, %v485_v43  ;;  %v695_v59 = vshrl.u32 %v1050_v13, %v1248_v35  ;;  %v700_v3 = vshll.u32 %v1051_v16, %v1241_v27  ;;  %v701_v7 = vshrl.u32 %v1047_v4, %v1248_v35 }
  0xf5   :  { %v361_v30 = vsel %vm359_vm1, %v346_v5, %v360_v26  ;;  %v364_v23 = vsel %vm362_vm3, %v363_v6, %v354_v17  ;;  %v619_v40 = vsel %vm617_vm4, %v618_v21, %v614_v63  ;;  %v1515_v31 = vor.u32 %v698_v28, %v697_v34 }
  0xf6   :  { %v365_v48 = vsel %vm358_vm0, %v361_v30, %v364_v23  ;;  %v489_v18 = vxor.u32 2147483648, %v488_v62  ;;  %v620_v13 = vadd.s32 %v619_v40, %v615_v2  ;;  %v702_v49 = vor.u32 %v701_v7, %v700_v3 }
  0xf7   :  { %v722_v4 = vsel %vm712_vm14, %v708_v50, 1326507024  ;;  %v1526_v16 = vsel %vm355_vm15, nan, %v365_v48  ;;  %v685_v27 = vor.u32 8388608, %v684_v1  ;;  %vm709_vm5 = vcmp.lt.s32.totalorder %v1410_v19, 1 }
  0xf8   :  { %890 = vst [vmem:[%s1674_s4] sm:$0xff] %v1526_v16  ;;  %v490_v41 = vsel %vm369_vm10, %v489_v18, %v488_v62  ;;  %v494_v38 = vsel %vm1484_vm2, 0, %v492_v12  ;;  %v621_v45 = vadd.s32 536870912, %v620_v13  ;;  %vm711_vm6 = vcmp.lt.s32.totalorder %v1410_v19, 3 }
  0xf9   :  { %v493_v47 = vsel %vm1484_vm2, %v1146_v55, %v490_v41  ;;  %v696_v50 = vor.u32 %v695_v59, %v694_v44  ;;  %vm710_vm7 = vcmp.lt.s32.totalorder %v1410_v19, 2  ;;  %v721_v60 = vsel %vm709_vm5, %v1515_v31, %v702_v49 }
  0xfa   :  { %v495_v14 = vmul.f32 %v493_v47, %v493_v47  ;;  %v1541_v61 = vshrl.u32 %v621_v45, 30  ;;  %v718_v29 = vsel %vm712_vm14, %v1425_v25, 920167782  ;;  %v511_v0 = vadd.s32 3, %v494_v38 }
  0xfb   :  { %v723_v54 = vsel %vm711_vm6, %v1425_v25, %v722_v4  ;;  %v1553_v24 = vshll.u32 %v685_v27, 8  ;;  %v717_v53 = vsel %vm709_vm5, %v696_v50, %v1515_v31  ;;  %v719_v37 = vsel %vm711_vm6, %v702_v49, %v718_v29 }
  0xfc   :  { %v496_v20 = vmul.f32 -0.001358992, %v495_v14  ;;  %v503_v22 = vmul.f32 -0.00019511016, %v495_v14  ;;  %v623_v52 = vshll.u32 %v1541_v61, 30  ;;  %v724_v57 = vsel %vm710_vm7, %v721_v60, %v723_v54 }
  0xfd   :  { %v726_v42 = vand.u32 65535, %v1553_v24  ;;  %v1563_v33 = vshrl.u32 %v1553_v24, 16  ;;  %v1569_v32 = vand.u32 3, %v511_v0  ;;  %v693_v11 = vshrl.u32 %v1049_v9, %v1248_v35 }
  0xfe   :  { %v497_v5 = vadd.f32 0.041655596, %v496_v20  ;;  %v504_v25 = vadd.f32 0.008332121, %v503_v22  ;;  %v1565_v46 = vsub.s32 %v620_v13, %v623_v52  ;;  %v728_v12 = vand.u32 65535, %v724_v57 }
  0xff   :  { %v729_v2 = vshrl.u32 %v724_v57, 16  ;;  %v720_v43 = vsel %vm710_vm7, %v717_v53, %v719_v37  ;;  %vm514_vm9 = vcmp.eq.s32.totalorder %v1569_v32, 0  ;;  %vm517_vm10 = vcmp.eq.s32.totalorder %v1569_v32, 2 }
 0x100   :  { %v498_v17 = vmul.f32 %v497_v5, %v495_v14  ;;  %v505_v6 = vmul.f32 %v504_v25, %v495_v14  ;;  %vm625_vm8 = vcmp.lt.s32.totalorder %v1565_v46, 0  ;;  %v626_v63 = vsub.s32 0, %v1565_v46 }
 0x101   :  { %v731_v56 = vmul.u32 %v729_v2, %v726_v42  ;;  %v1578_v1 = vmul.u32 %v728_v12, %v1563_v33  ;;  %v730_v9 = vmul.u32 %v728_v12, %v726_v42  ;;  %v616_v35 = vadd.s32 %v1476_v51, %v1473_v15 }
 0x102   :  { %v499_v34 = vadd.f32 -0.4999988, %v498_v17  ;;  %v506_v26 = vadd.f32 -0.16666654, %v505_v6  ;;  %v627_v21 = vsel %vm625_vm8, %v626_v63, %v1565_v46  ;;  %v750_v62 = vand.u32 65535, %v720_v43 }
 0x103   :  { %v628_v44 = vclz %v627_v21  ;;  %v734_v28 = vshll.u32 %v731_v56, 16  ;;  %vm513_vm11 = vcmp.lt.s32.totalorder %v1569_v32, 2  ;;  %v1588_v7 = vsel %vm709_vm5, %v693_v11, %v696_v50 }
 0x104   :  { %v500_v59 = vmul.f32 %v499_v34, %v495_v14  ;;  %v507_v3 = vmul.f32 %v506_v26, %v495_v14  ;;  %v751_v30 = vshrl.u32 %v720_v43, 16  ;;  %vm510_vm12 = vweird.f32 %v1146_v55 }
 0x105   :  { %v878_v23 = vpop.f32.mrf.mxu0  ;;  %v959_v40 = vadd.s32 4294967294, %v628_v44  ;;  %v714_v48 = vsel %vm712_vm14, %v702_v49, 2102212464  ;;  %v733_v15 = vmul.u32 %v729_v2, %v1563_v33  ;;  %v736_v51 = vshll.u32 %v1578_v1, 16 }
 0x106   :  { %v501_v18 = vadd.f32 1.0, %v500_v59  ;;  %v508_v13 = vadd.f32 1.0, %v507_v3  ;;  %vm738_vm13 = vc.u32 %v730_v9, %v734_v28  ;;  %v740_v4 = vadd.s32 %v734_v28, %v730_v9 }
 0x107   :  { %vm960_vm15 = vcmp.lt.s32.totalorder %v959_v40, 0  ;;  %v735_v41 = vshrl.u32 %v731_v56, 16  ;;  %v739_v38 = vsel %vm738_vm13, 1, %v1053_v39  ;;  %v752_v45 = vmul.u32 %v750_v62, %v726_v42 }
 0x108   :  { %v509_v50 = vmul.f32 %v508_v13, %v493_v47  ;;  %v518_v14 = vxor.u32 2147483648, %v501_v18  ;;  %v631_v60 = vsel %vm960_vm15, 0, %v959_v40  ;;  %v753_v29 = vmul.u32 %v751_v30, %v726_v42 }
 0x109   :  { %v632_v0 = vsub.s32 32, %v631_v60  ;;  %v636_v49 = vsub.s32 4294967266, %v631_v60  ;;  %v737_v54 = vshrl.u32 %v1578_v1, 16  ;;  %v741_v20 = vadd.s32 %v739_v38, %v733_v15 }
 0x10a   :  { %v849_v27 = vpop.f32.mrf.mxu2  ;;  %v515_v52 = vxor.u32 2147483648, %v509_v50  ;;  %vm742_vm14 = vc.u32 %v740_v4, %v736_v51  ;;  %v754_v53 = vmul.u32 %v750_v62, %v1563_v33  ;;  %v633_v57 = vshll.u32 %v1565_v46, %v631_v60 }
 0x10b   :  { %v850_v22 = vadd.f32 %v849_v27, %v1526_v16  ;;  %v634_v5 = vshrl.u32 %v616_v35, %v632_v0  ;;  %v637_v25 = vadd.s32 127, %v636_v49  ;;  %v743_v47 = vsel %vm742_vm14, 1, %v1053_v39 }
 0x10c   :  { %v516_v42 = vsel %vm514_vm9, %v501_v18, %v515_v52  ;;  %v519_v37 = vsel %vm517_vm10, %v518_v14, %v509_v50  ;;  %v745_v11 = vadd.s32 %v743_v47, %v741_v20  ;;  %v756_v12 = vshll.u32 %v753_v29, 16 }
 0x10d   :  { %v520_v16 = vsel %vm513_vm11, %v516_v42, %v519_v37  ;;  %v635_v2 = vor.u32 %v634_v5, %v633_v57  ;;  %v638_v17 = vshll.u32 %v637_v25, 23  ;;  %v755_v6 = vmul.u32 %v751_v30, %v1563_v33  ;;  %v881_v34 = vpop.f32.mrf.mxu0 }
 0x10e   :  { %v879_v46 = vadd.f32 %v878_v23, %v850_v22  ;;  %v521_v63 = vsel %vm510_vm12, nan, %v520_v16  ;;  %v746_v43 = vadd.s32 %v745_v11, %v735_v41  ;;  %v758_v56 = vshll.u32 %v754_v53, 16 }
 0x10f   :  { %891 = vst [vmem:[%s1674_s4 + $0x8] sm:$0xff] %v521_v63  ;;  %v639_v26 = vor.u32 4788187, %v638_v17  ;;  %v757_v21 = vshrl.u32 %v753_v29, 16  ;;  %vm760_vm0 = vc.u32 %v752_v45, %v756_v12  ;;  %v762_v32 = vadd.s32 %v756_v12, %v752_v45 }
 0x110   :  { %v642_v35 = vcvt.s32.f32 %v635_v2  ;;  %v747_v44 = vadd.s32 %v746_v43, %v737_v54  ;;  %v761_v33 = vsel %vm760_vm0, 1, %v1053_v39  ;;  %v715_v3 = vsel %vm711_vm6, %v1515_v31, %v714_v48 }
 0x111   :  { %v640_v28 = vand.u32 2147483647, %v639_v26  ;;  %v763_v55 = vadd.s32 %v761_v33, %v755_v6  ;;  %vm764_vm1 = vc.u32 %v762_v32, %v758_v56  ;;  %v766_v62 = vadd.s32 %v762_v32, %v758_v56 }
 0x112   :  { %v852_v1 = vpop.f32.mrf.mxu3  ;;  %v759_v30 = vshrl.u32 %v754_v53, 16  ;;  %v765_v23 = vsel %vm764_vm1, 1, %v1053_v39  ;;  %v907_v18 = vmul.f32 %v879_v46, %v879_v46  ;;  %v716_v41 = vsel %vm710_vm7, %v1588_v7, %v715_v3 }
 0x113   :  { %v853_v9 = vadd.f32 %v852_v1, %v521_v63  ;;  %v643_v40 = vmul.f32 %v642_v35, %v640_v28  ;;  %v767_v15 = vadd.s32 %v765_v23, %v763_v55  ;;  %v771_v51 = vadd.s32 %v766_v62, %v747_v44 }
 0x114   :  { %vm772_vm2 = vc.u32 %v747_v44, %v766_v62  ;;  %vm524_vm3 = vcmp.lt.s32.totalorder %v1161_v8, 0  ;;  %vm1628_vm4 = vcmp.le.f32.partialorder %v522_v10, 0.7853982  ;;  %v646_v50 = vsub.s32 4, %v1541_v61 }
 0x115   :  { %v882_v59 = vadd.f32 %v881_v34, %v853_v9  ;;  %v644_v27 = vxor.u32 2147483648, %v643_v40  ;;  %v768_v38 = vadd.s32 %v767_v15, %v757_v21  ;;  %v770_v7 = vmul.u32 %v1553_v24, %v716_v41 }
 0x116   :  { %v647_v10 = vsel %vm524_vm3, %v646_v50, %v1541_v61  ;;  %vm665_vm9 = vweird.f32 %v1161_v8  ;;  %v1054_v23 = vmov 0.0   ;;  %vm679_vm11 = vcmp.lt.s32.totalorder %v1183_v36, 0 }
 0x117   :  { %v1618_v13 = vadd.f32 %v882_v59, %v879_v46  ;;  %v908_v4 = vmul.f32 %v882_v59, %v882_v59  ;;  %v645_v48 = vsel %vm524_vm3, %v644_v27, %v643_v40  ;;  %v769_v45 = vadd.s32 %v768_v38, %v759_v30  ;;  %39 = vst [vmem:[%s1675_s5] sm:$0x3] %v1054_v23 }
 0x118   :  { %v648_v19 = vsel %vm1628_vm4, %v1161_v8, %v645_v48  ;;  %v649_v53 = vsel %vm1628_vm4, 0, %v647_v10  ;;  %vm678_vm12 = vcmp.le.f32.partialorder %v677_v58, 0.7853982  ;;  %v884_v10 = vpop.f32.mrf.mxu1  ;;  %vm820_vm0 = vweird.f32 %v1183_v36 }
 0x119   :  { %v1624_v31 = vadd.f32 %v908_v4, %v907_v18  ;;  %v650_v14 = vmul.f32 %v648_v19, %v648_v19  ;;  %v773_v60 = vadd.s32 1, %v769_v45  ;;  %v666_v42 = vadd.s32 3, %v649_v53 }
 0x11b   :  { %v651_v29 = vmul.f32 -0.001358992, %v650_v14  ;;  %v658_v0 = vmul.f32 -0.00019511016, %v650_v14  ;;  %v774_v49 = vsel %vm772_vm2, %v773_v60, %v769_v45  ;;  %v667_v61 = vand.u32 3, %v666_v42 }
 0x11c   :  { %v775_v54 = vadd.s32 %v774_v49, %v770_v7 }
 0x11d   :  { %v652_v20 = vadd.f32 0.041655596, %v651_v29  ;;  %v659_v22 = vadd.f32 0.008332121, %v658_v0  ;;  %vm669_vm6 = vcmp.eq.s32.totalorder %v667_v61, 0  ;;  %vm672_vm7 = vcmp.eq.s32.totalorder %v667_v61, 2  ;;  %v855_v29 = vpop.f32.mrf.mxu3 }
 0x11e   :  { %v776_v52 = vadd.s32 536870912, %v775_v54  ;;  %vm668_vm8 = vcmp.lt.s32.totalorder %v667_v61, 2 }
 0x11f   :  { %v653_v57 = vmul.f32 %v652_v20, %v650_v14  ;;  %v660_v5 = vmul.f32 %v659_v22, %v650_v14 }
 0x120   :  { %v777_v25 = vshrl.u32 %v776_v52, 30 }
 0x121   :  { %v654_v47 = vadd.f32 -0.4999988, %v653_v57  ;;  %v661_v24 = vadd.f32 -0.16666654, %v660_v5 }
 0x122   :  { %v778_v37 = vshll.u32 %v777_v25, 30  ;;  %v801_v4 = vsub.s32 4, %v777_v25 }
 0x123   :  { %v655_v11 = vmul.f32 %v654_v47, %v650_v14  ;;  %v662_v12 = vmul.f32 %v661_v24, %v650_v14 }
 0x124   :  { %v779_v16 = vsub.s32 %v775_v54, %v778_v37  ;;  %v802_v38 = vsel %vm679_vm11, %v801_v4, %v777_v25 }
 0x125   :  { %v656_v2 = vadd.f32 1.0, %v655_v11  ;;  %v663_v17 = vadd.f32 1.0, %v662_v12  ;;  %v804_v45 = vsel %vm678_vm12, 0, %v802_v38  ;;  %v858_v37 = vpop.f32.mrf.mxu3 }
 0x126   :  { %vm780_vm5 = vcmp.lt.s32.totalorder %v779_v16, 0  ;;  %v781_v6 = vsub.s32 0, %v779_v16  ;;  %v821_v60 = vadd.s32 3, %v804_v45 }
 0x127   :  { %v664_v46 = vmul.f32 %v663_v17, %v648_v19  ;;  %v673_v63 = vxor.u32 2147483648, %v656_v2 }
 0x128   :  { %v782_v43 = vsel %vm780_vm5, %v781_v6, %v779_v16  ;;  %v822_v58 = vand.u32 3, %v821_v60 }
 0x129   :  { %v670_v56 = vxor.u32 2147483648, %v664_v46  ;;  %v783_v1 = vclz %v782_v43  ;;  %v674_v26 = vsel %vm672_vm7, %v673_v63, %v664_v46 }
 0x12a   :  { %vm827_vm13 = vcmp.eq.s32.totalorder %v822_v58, 2  ;;  %vm824_vm15 = vcmp.eq.s32.totalorder %v822_v58, 0  ;;  %vm823_vm14 = vcmp.lt.s32.totalorder %v822_v58, 2 }
 0x12b   :  { %v671_v34 = vsel %vm669_vm6, %v656_v2, %v670_v56  ;;  %v962_v21 = vadd.s32 4294967294, %v783_v1 }
 0x12c   :  { %v675_v32 = vsel %vm668_vm8, %v671_v34, %v674_v26 }
 0x12d   :  { %v676_v9 = vsel %vm665_vm9, nan, %v675_v32  ;;  %vm963_vm10 = vcmp.lt.s32.totalorder %v962_v21, 0 }
 0x12e   :  { %892 = vst [vmem:[%s1674_s4 + $0x10] sm:$0xff] %v676_v9  ;;  %v786_v35 = vsel %vm963_vm10, 0, %v962_v21  ;;  %v856_v53 = vadd.f32 %v855_v29, %v676_v9 }
 0x12f   :  { %v787_v44 = vsub.s32 32, %v786_v35  ;;  %v791_v33 = vsub.s32 4294967266, %v786_v35  ;;  %v788_v28 = vshll.u32 %v779_v16, %v786_v35  ;;  %v887_v16 = vpop.f32.mrf.mxu1 }
 0x130   :  { %v885_v24 = vadd.f32 %v884_v10, %v856_v53 }
 0x131   :  { %v789_v55 = vshrl.u32 %v771_v51, %v787_v44  ;;  %v792_v62 = vadd.s32 127, %v791_v33  ;;  %v894_v33 = vld [vmem:[%s1675_s5] sm:$0x1] }
 0x132   :  { %v909_v2 = vmul.f32 %v885_v24, %v885_v24  ;;  %v896_v61 = vadd.f32 %v1618_v13, %v885_v24 }
 0x133   :  { %v790_v59 = vor.u32 %v789_v55, %v788_v28  ;;  %v793_v3 = vshll.u32 %v792_v62, 23 }
 0x134   :  { %v912_v46 = vadd.f32 %v1624_v31, %v909_v2  ;;  %v906_v31 = vld [vmem:[%s1675_s5 + $0x1] sm:$0x1] }
 0x135   :  { %v794_v30 = vor.u32 4788187, %v793_v3  ;;  %v797_v40 = vcvt.s32.f32 %v790_v59 }
 0x137   :  { %v795_v8 = vand.u32 2147483647, %v794_v30 }
 0x139   :  { %v798_v15 = vmul.f32 %v797_v40, %v795_v8 }
 0x13b   :  { %v799_v18 = vxor.u32 2147483648, %v798_v15 }
 0x13d   :  { %v800_v51 = vsel %vm679_vm11, %v799_v18, %v798_v15 }
 0x13e   :  { %v803_v27 = vsel %vm678_vm12, %v1183_v36, %v800_v51 }
 0x13f   :  { %v805_v41 = vmul.f32 %v803_v27, %v803_v27 }
 0x141   :  { %v806_v39 = vmul.f32 -0.001358992, %v805_v41  ;;  %v813_v48 = vmul.f32 -0.00019511016, %v805_v41 }
 0x143   :  { %v807_v50 = vadd.f32 0.041655596, %v806_v39  ;;  %v814_v19 = vadd.f32 0.008332121, %v813_v48 }
 0x145   :  { %v808_v7 = vmul.f32 %v807_v50, %v805_v41  ;;  %v815_v14 = vmul.f32 %v814_v19, %v805_v41 }
 0x147   :  { %v809_v0 = vadd.f32 -0.4999988, %v808_v7  ;;  %v816_v49 = vadd.f32 -0.16666654, %v815_v14 }
 0x149   :  { %v810_v54 = vmul.f32 %v809_v0, %v805_v41  ;;  %v817_v20 = vmul.f32 %v816_v49, %v805_v41 }
 0x14b   :  { %v811_v22 = vadd.f32 1.0, %v810_v54  ;;  %v818_v52 = vadd.f32 1.0, %v817_v20 }
 0x14d   :  { %v819_v57 = vmul.f32 %v818_v52, %v803_v27  ;;  %v828_v5 = vxor.u32 2147483648, %v811_v22 }
 0x14f   :  { %v825_v25 = vxor.u32 2147483648, %v819_v57  ;;  %v829_v47 = vsel %vm827_vm13, %v828_v5, %v819_v57 }
 0x151   :  { %v826_v42 = vsel %vm824_vm15, %v811_v22, %v825_v25 }
 0x152   :  { %v830_v11 = vsel %vm823_vm14, %v826_v42, %v829_v47 }
 0x153   :  { %v831_v12 = vsel %vm820_vm0, nan, %v830_v11 }
 0x154   :  { %v859_v17 = vadd.f32 %v858_v37, %v831_v12  ;;  %893 = vst [vmem:[%s1674_s4 + $0x18] sm:$0xff] %v831_v12 }
 0x156   :  { %v888_v6 = vadd.f32 %v887_v16, %v859_v17 }
 0x158   :  { %v897_v63 = vadd.f32 %v896_v61, %v888_v6  ;;  %v910_v43 = vmul.f32 %v888_v6, %v888_v6 }
 0x15a   :  { %v898_v56 = vrot.slane %v897_v63, 4  ;;  %v913_v1 = vadd.f32 %v912_v46, %v910_v43 }
 0x15c   :  { %v899_v34 = vadd.f32 %v898_v56, %v897_v63  ;;  %v914_v36 = vrot.slane %v913_v1, 4 }
 0x15e   :  { %v900_v26 = vrot.slane %v899_v34, 2  ;;  %v915_v21 = vadd.f32 %v914_v36, %v913_v1 }
 0x160   :  { %v901_v32 = vadd.f32 %v900_v26, %v899_v34  ;;  %v916_v9 = vrot.slane %v915_v21, 2 }
 0x162   :  { %v902_v35 = vrot.slane %v901_v32, 1  ;;  %v917_v44 = vadd.f32 %v916_v9, %v915_v21 }
 0x164   :  { %v903_v13 = vadd.f32 %v902_v35, %v901_v32  ;;  %v918_v28 = vrot.slane %v917_v44, 1 }
 0x166   :  { %v904_v55 = vadd.f32 %v903_v13, %v894_v33  ;;  %v919_v62 = vadd.f32 %v918_v28, %v917_v44 }
 0x168   :  { %905 = vst [vmem:[%s1675_s5] sm:$0x1] %v904_v55  ;;  %v920_v59 = vadd.f32 %v919_v62, %v906_v31 }
 0x16a   :  { %921 = vst [vmem:[%s1675_s5 + $0x1] sm:$0x1] %v920_v59 }
 0x16b   :  { %930 = vsyncpa [#allocation3], 1 }

</bundles_post_ra>
